<compile_context>
chip_gen: v6e
topology: v6e:2x2x1
jax: 0.10.0
libtpu: 0.0.40
codegen_flags: <defaults>
</compile_context>

<pallas_src>
import functools

import numpy as np
import jax
import jax.numpy as jnp
from jax.experimental import pallas as pl
from jax.experimental.pallas import tpu as pltpu


# ----------------------------- window setup (glue) ---------------------------

def create_window_1d(win_size, gaussian_weights=False, sigma=1.5):
    """1-D window; the PyTorch 2-D window is the outer product of this."""
    if gaussian_weights:
        xs = np.arange(win_size, dtype=np.float64)
        g = np.exp(-((xs - win_size // 2) ** 2) / (2.0 * sigma ** 2))
        w = (g / g.sum()).astype(np.float32)
    else:
        w = np.ones(win_size, dtype=np.float32) / win_size
    return w


def _band_matrices(w1d, h, w, q):
    """Band matrices implementing the separable *valid* window convolution."""
    k = len(w1d)
    hc, wc = h - k + 1, w - k + 1
    # H (sublane) pass, applied from the left:  (Hc, H) @ (H, .)
    bh = np.zeros((hc, h), np.float32)
    for a in range(k):
        bh[np.arange(hc), np.arange(hc) + a] = w1d[a]
    # W (lane) pass, applied from the right, block-diagonal over the Q planes
    # packed along the lane axis:  (., Q*W) @ (Q*W, Q*Wc)
    bw1 = np.zeros((w, wc), np.float32)
    for a in range(k):
        bw1[np.arange(wc) + a, np.arange(wc)] = w1d[a]
    bw = np.zeros((q * w, q * wc), np.float32)
    seg = np.zeros((q * wc, q), np.float32)        # 0/1 per-plane column sums
    for i in range(q):
        bw[i * w:(i + 1) * w, i * wc:(i + 1) * wc] = bw1
        seg[i * wc:(i + 1) * wc, i] = 1.0
    return bh, bw, seg


def _plan(n_planes, h, w):
    """Choose (q, p, ngroups, vmem_limit): lane-pack factor, packed rows per
    grid step and number of grid steps.  Generation-aware via TpuInfo."""
    vmem_cap = 64 << 20                            # conservative (v7x) default
    try:
        vmem_cap = int(pltpu.get_tpu_info().vmem_capacity_bytes)
    except Exception:
        pass
    vmem_limit = int(min(vmem_cap * 5 // 8, 96 << 20))   # ~40 MiB v7x, ~80 MiB v5e/v6e

    # Lane packing: planes per packed row so the last dim approaches 128 lanes.
    q = max(1, min(128 // w, n_planes)) if w < 128 else 1
    m = -(-n_planes // q)
    # Keep at least 2 packed rows when possible so the "parallel" grid axis
    # can feed both v7x TensorCores.
    while m < 2 and q > 1:
        q = max(1, q // 2)
        m = -(-n_planes // q)

    # Packed rows per grid step: amortize the ~0.35 us/step overhead ...
    row_bytes = h * q * w * 4
    target_elems = 262144 if vmem_cap > (64 << 20) else 131072
    target_p = max(1, target_elems // (h * q * w))
    # ... while leaving VMEM headroom: 2 inputs x 2 pipeline buffers per row
    # plus ~20 row-sized f32 temporaries live inside one loop iteration.
    budget = vmem_limit // 2
    max_p_mem = max(1, (budget - 20 * row_bytes) // (4 * row_bytes))
    p = int(max(1, min(m, target_p, max_p_mem)))

    ngroups = -(-m // p)
    if m >= 2:
        ngroups = max(ngroups, 2)                  # >= 2 grid steps (v7x)
    p = -(-m // ngroups)                           # rebalance padding
    ngroups = -(-m // p)
    return q, p, ngroups, vmem_limit


# --------------------------------- kernel ------------------------------------

def _ssim_block_kernel(gt_ref, pr_ref, bh_ref, bw_ref, seg_ref, out_ref, *,
                       cov_norm, c1, c2, unroll, precision):
    """One grid step: P packed rows of (H, Q*W) -> per-plane SSIM sums."""
    p = gt_ref.shape[0]
    bh = bh_ref[...]                               # (Hc, H)     band
    bw = bw_ref[...]                               # (Q*W, Q*Wc) block-diag band
    seg = seg_ref[...]                             # (Q*Wc, Q)   0/1 plane sums

    def conv2(x):                                  # (H, Q*W) -> (Hc, Q*Wc)
        # Both separable passes on the MXU (idle otherwise); valid conv ==
        # interior of the zero-padded conv, so the pad:-pad crop is free.
        t = jnp.dot(x, bw, preferred_element_type=jnp.float32,
                    precision=precision)
        return jnp.dot(bh, t, preferred_element_type=jnp.float32,
                       precision=precision)

    def body(pp, carry):
        g = gt_ref[pp]                             # (H, Q*W), pre-scaled by 1/R
        r = pr_ref[pp]
        ux = conv2(g)
        uy = conv2(r)
        uxx = conv2(g * g) - ux * ux
        uyy = conv2(r * r) - uy * uy
        uxy = conv2(g * r) - ux * uy

        # cov_norm factored out: vx + vy + C2 == cov_norm*(uxx+uyy) + C2, etc.
        num = (2.0 * ux * uy + c1) * ((2.0 * cov_norm) * uxy + c2)
        den = (ux * ux + uy * uy + c1) * (cov_norm * (uxx + uyy) + c2)
        # EUP reciprocal + one Newton step (keeps the divide off the VALU while
        # staying far inside the 1e-3 tolerance).
        inv = pl.reciprocal(den, approx=True)
        inv = inv * (2.0 - den * inv)
        s = num * inv                              # (Hc, Q*Wc) SSIM map

        rows = jnp.sum(s, axis=0, keepdims=True)   # (1, Q*Wc)
        out_ref[pp] = jnp.dot(rows, seg,           # per-plane sums -> (1, Q)
                              preferred_element_type=jnp.float32,
                              precision=precision)
        return carry

    jax.lax.fori_loop(0, p, body, 0, unroll=unroll)


# --------------------------------- module ------------------------------------

class SSIM:
    """JAX/Pallas equivalent of merlinth.losses.ssim.SSIM (forward only)."""

    def __init__(self, win_size=7, gaussian_weights=False, channel=1,
                 size_average=True, **kwargs):
        self.win_size = win_size
        self.gaussian_weights = gaussian_weights
        self.channel = channel
        self.size_average = size_average
        self.kwargs = dict(kwargs)
        sigma = self.kwargs.get("sigma", 1.5)
        # Deterministic "parameter": the separable convolution window.
        self.w1d = create_window_1d(win_size, gaussian_weights, sigma)

    def __call__(self, gt, pred, data_range=None):
        b, c, h, w = gt.shape
        k1 = float(self.kwargs.get("K1", 0.01))
        k2 = float(self.kwargs.get("K2", 0.03))
        use_sample_cov = self.kwargs.get("use_sample_covariance", True)

        win = self.win_size
        np_ = win * win
        cov_norm = np_ / (np_ - 1) if use_sample_cov else 1.0
        pad = win // 2
        hc, wc = h - 2 * pad, w - 2 * pad

        gt = gt.astype(jnp.float32)
        pred = pred.astype(jnp.float32)

        # data_range handling (None / scalar / per-batch array), as in PyTorch.
        if data_range is None:
            data_range = jnp.max(gt)
        r = jnp.asarray(data_range, jnp.float32).reshape(-1)
        r = jnp.broadcast_to(r, (b,)).reshape(b, 1, 1, 1)

        # SSIM(x, y; C1=(K1*R)^2, C2=(K2*R)^2) == SSIM(x/R, y/R; K1^2, K2^2):
        # pre-scale by 1/R so the kernel only needs compile-time constants.
        inv_r = 1.0 / r
        gt_s = (gt * inv_r).reshape(b * c, h, w)
        pr_s = (pred * inv_r).reshape(b * c, h, w)

        n = b * c
        q, p, ngroups, vmem_limit = _plan(n, h, w)
        mpad = ngroups * p                         # packed rows (padded)
        npad = mpad * q                            # planes (padded)
        if npad != n:
            padw = ((0, npad - n), (0, 0), (0, 0))
            gt_s = jnp.pad(gt_s, padw)
            pr_s = jnp.pad(pr_s, padw)

        def lane_pack(x):                          # (Npad,H,W)->(Mpad,H,Q*W)
            x = x.reshape(mpad, q, h, w).transpose(0, 2, 1, 3)
            return x.reshape(mpad, h, q * w)

        gt_p = lane_pack(gt_s)
        pr_p = lane_pack(pr_s)

        bh, bw, seg = _band_matrices(self.w1d, h, w, q)
        bh, bw, seg = jnp.asarray(bh), jnp.asarray(bw), jnp.asarray(seg)

        def run(precision):
            kern = functools.partial(
                _ssim_block_kernel, cov_norm=float(cov_norm),
                c1=k1 * k1, c2=k2 * k2, unroll=bool(p <= 8),
                precision=precision)
            return pl.pallas_call(
                kern,
                out_shape=jax.ShapeDtypeStruct((mpad, 1, q), jnp.float32),
                grid=(ngroups,),
                in_specs=[
                    pl.BlockSpec((p, h, q * w), lambda i: (i, 0, 0)),
                    pl.BlockSpec((p, h, q * w), lambda i: (i, 0, 0)),
                    pl.BlockSpec((hc, h), lambda i: (0, 0)),
                    pl.BlockSpec((q * w, q * wc), lambda i: (0, 0)),
                    pl.BlockSpec((q * wc, q), lambda i: (0, 0)),
                ],
                out_specs=pl.BlockSpec((p, 1, q), lambda i: (i, 0, 0)),
                compiler_params=pltpu.CompilerParams(
                    dimension_semantics=("parallel",),
                    vmem_limit_bytes=vmem_limit),
            )(gt_p, pr_p, bh, bw, seg)

        try:
            # HIGHEST keeps the band-matmul conv at ~f32 accuracy on the MXU.
            plane_sums = run(jax.lax.Precision.HIGHEST)
        except Exception:
            # Mosaic f32 matmuls are full precision by default; fall back if
            # this toolchain rejects an explicit precision request.
            plane_sums = run(None)

        sums = plane_sums.reshape(npad)[:n]        # padded planes dropped here
        crop = hc * wc
        if self.size_average:
            return jnp.sum(sums) / (n * crop)
        # size_average=False: per-batch mean over (C, cropped H, cropped W)
        return sums.reshape(b, c).sum(-1) / (c * crop)


# ------------------------- pure-JAX reference (check) ------------------------

def _ssim_ref(gt, pred, win_size=7, gaussian_weights=False,
              k1=0.01, k2=0.03, use_sample_cov=True, data_range=None):
    b, c, h, w = gt.shape
    w1d = create_window_1d(win_size, gaussian_weights)
    w2d = np.outer(w1d, w1d).astype(np.float32)
    window = jnp.asarray(np.broadcast_to(w2d, (c, 1, win_size, win_size)).copy())
    pad = win_size // 2

    def conv(x):
        return jax.lax.conv_general_dilated(
            x, window, window_strides=(1, 1),
            padding=[(pad, pad), (pad, pad)],
            dimension_numbers=("NCHW", "OIHW", "NCHW"),
            feature_group_count=c,
            precision=jax.lax.Precision.HIGHEST)

    if data_range is None:
        data_range = jnp.max(gt)
    r = jnp.asarray(data_range, jnp.float32)
    c1 = (k1 * r) ** 2
    c2 = (k2 * r) ** 2
    np_ = win_size ** 2
    cov_norm = np_ / (np_ - 1) if use_sample_cov else 1.0

    ux, uy = conv(gt), conv(pred)
    uxx = conv(gt * gt) - ux * ux
    uyy = conv(pred * pred) - uy * uy
    uxy = conv(gt * pred) - ux * uy
    vx, vy, vxy = cov_norm * uxx, cov_norm * uyy, cov_norm * uxy
    s = ((2 * ux * uy + c1) * (2 * vxy + c2)
         / ((ux * ux + uy * uy + c1) * (vx + vy + c2)))
    return s[:, :, pad:-pad, pad:-pad].mean()


# ----------------------------------- main -------------------------------------

if __name__ == "__main__":
    key = jax.random.PRNGKey(0)
    kg, kn = jax.random.split(key)
    B, C, H, W = 2, 4, 16, 16
    gt = jax.random.uniform(kg, (B, C, H, W), jnp.float32)
    pred = gt + 0.1 * jax.random.normal(kn, (B, C, H, W), jnp.float32)

    mod = SSIM(win_size=7, gaussian_weights=False, channel=C, size_average=True)
    out = jax.block_until_ready(mod(gt, pred))

    ref = jax.block_until_ready(_ssim_ref(gt, pred, win_size=7))
    assert jnp.allclose(out, ref, rtol=1e-3, atol=1e-3), (float(out), float(ref))
    print("KERNEL_OK")
</pallas_src>

<mosaic_0001>
module attributes {stable_mosaic.version = 11 : i64} {
  func.func @_ssim_block_kernel(%arg0: i32, %arg1: memref<1x16x64xf32, #tpu.memory_space<vmem>>, %arg2: memref<1x16x64xf32, #tpu.memory_space<vmem>>, %arg3: memref<10x16xf32, #tpu.memory_space<vmem>>, %arg4: memref<64x40xf32, #tpu.memory_space<vmem>>, %arg5: memref<40x4xf32, #tpu.memory_space<vmem>>, %arg6: memref<1x1x4xf32, #tpu.memory_space<vmem>>) attributes {dimension_semantics = [#tpu.dimension_semantics<parallel>], iteration_bounds = array<i64: 2>, scalar_prefetch = 0 : i64, scratch_operands = 0 : i64, tpu.core_type = #tpu.core_type<tc>, window_params = [{transform_indices = @transform_0, window_bounds = array<i64: 1, 16, 64>}, {transform_indices = @transform_1, window_bounds = array<i64: 1, 16, 64>}, {pipeline_mode = #tpu.pipeline_mode<synchronous>, transform_indices = @transform_2, window_bounds = array<i64: 10, 16>}, {pipeline_mode = #tpu.pipeline_mode<synchronous>, transform_indices = @transform_3, window_bounds = array<i64: 64, 40>}, {pipeline_mode = #tpu.pipeline_mode<synchronous>, transform_indices = @transform_4, window_bounds = array<i64: 40, 4>}, {transform_indices = @transform_5, window_bounds = array<i64: 1, 1, 4>}]} {
    %c0 = arith.constant 0 : index
    %c0_0 = arith.constant 0 : index
    %0 = vector.load %arg3[%c0, %c0_0] : memref<10x16xf32, #tpu.memory_space<vmem>>, vector<10x16xf32>
    %c0_1 = arith.constant 0 : index
    %c0_2 = arith.constant 0 : index
    %1 = vector.load %arg4[%c0_1, %c0_2] : memref<64x40xf32, #tpu.memory_space<vmem>>, vector<64x40xf32>
    %c0_3 = arith.constant 0 : index
    %c0_4 = arith.constant 0 : index
    %2 = vector.load %arg5[%c0_3, %c0_4] : memref<40x4xf32, #tpu.memory_space<vmem>>, vector<40x4xf32>
    %c0_i32 = arith.constant 0 : i32
    %3 = arith.index_cast %c0_i32 : i32 to index
    %c0_5 = arith.constant 0 : index
    %c0_6 = arith.constant 0 : index
    %4 = vector.load %arg1[%3, %c0_5, %c0_6] : memref<1x16x64xf32, #tpu.memory_space<vmem>>, vector<1x16x64xf32>
    %5 = vector.shape_cast %4 : vector<1x16x64xf32> to vector<16x64xf32>
    %6 = arith.index_cast %c0_i32 : i32 to index
    %c0_7 = arith.constant 0 : index
    %c0_8 = arith.constant 0 : index
    %7 = vector.load %arg2[%6, %c0_7, %c0_8] : memref<1x16x64xf32, #tpu.memory_space<vmem>>, vector<1x16x64xf32>
    %8 = vector.shape_cast %7 : vector<1x16x64xf32> to vector<16x64xf32>
    %cst = arith.constant dense<0.000000e+00> : vector<16x40xf32>
    %9 = tpu.matmul %5, %1, %cst {dimension_numbers = #tpu.dot_dimension_numbers<[1], [0], [0], [1], [0, 0, 1, 1], [], []>, precision = #tpu.contract_precision<fp32>} : vector<16x64xf32>, vector<64x40xf32>, vector<16x40xf32> -> vector<16x40xf32>
    %cst_9 = arith.constant dense<0.000000e+00> : vector<10x40xf32>
    %10 = tpu.matmul %0, %9, %cst_9 {dimension_numbers = #tpu.dot_dimension_numbers<[1], [0], [0], [1], [0, 0, 1, 1], [], []>, precision = #tpu.contract_precision<fp32>} : vector<10x16xf32>, vector<16x40xf32>, vector<10x40xf32> -> vector<10x40xf32>
    %cst_10 = arith.constant dense<0.000000e+00> : vector<16x40xf32>
    %11 = tpu.matmul %8, %1, %cst_10 {dimension_numbers = #tpu.dot_dimension_numbers<[1], [0], [0], [1], [0, 0, 1, 1], [], []>, precision = #tpu.contract_precision<fp32>} : vector<16x64xf32>, vector<64x40xf32>, vector<16x40xf32> -> vector<16x40xf32>
    %cst_11 = arith.constant dense<0.000000e+00> : vector<10x40xf32>
    %12 = tpu.matmul %0, %11, %cst_11 {dimension_numbers = #tpu.dot_dimension_numbers<[1], [0], [0], [1], [0, 0, 1, 1], [], []>, precision = #tpu.contract_precision<fp32>} : vector<10x16xf32>, vector<16x40xf32>, vector<10x40xf32> -> vector<10x40xf32>
    %13 = arith.mulf %5, %5 : vector<16x64xf32>
    %cst_12 = arith.constant dense<0.000000e+00> : vector<16x40xf32>
    %14 = tpu.matmul %13, %1, %cst_12 {dimension_numbers = #tpu.dot_dimension_numbers<[1], [0], [0], [1], [0, 0, 1, 1], [], []>, precision = #tpu.contract_precision<fp32>} : vector<16x64xf32>, vector<64x40xf32>, vector<16x40xf32> -> vector<16x40xf32>
    %cst_13 = arith.constant dense<0.000000e+00> : vector<10x40xf32>
    %15 = tpu.matmul %0, %14, %cst_13 {dimension_numbers = #tpu.dot_dimension_numbers<[1], [0], [0], [1], [0, 0, 1, 1], [], []>, precision = #tpu.contract_precision<fp32>} : vector<10x16xf32>, vector<16x40xf32>, vector<10x40xf32> -> vector<10x40xf32>
    %16 = arith.mulf %10, %10 : vector<10x40xf32>
    %17 = arith.subf %15, %16 : vector<10x40xf32>
    %18 = arith.mulf %8, %8 : vector<16x64xf32>
    %cst_14 = arith.constant dense<0.000000e+00> : vector<16x40xf32>
    %19 = tpu.matmul %18, %1, %cst_14 {dimension_numbers = #tpu.dot_dimension_numbers<[1], [0], [0], [1], [0, 0, 1, 1], [], []>, precision = #tpu.contract_precision<fp32>} : vector<16x64xf32>, vector<64x40xf32>, vector<16x40xf32> -> vector<16x40xf32>
    %cst_15 = arith.constant dense<0.000000e+00> : vector<10x40xf32>
    %20 = tpu.matmul %0, %19, %cst_15 {dimension_numbers = #tpu.dot_dimension_numbers<[1], [0], [0], [1], [0, 0, 1, 1], [], []>, precision = #tpu.contract_precision<fp32>} : vector<10x16xf32>, vector<16x40xf32>, vector<10x40xf32> -> vector<10x40xf32>
    %21 = arith.mulf %12, %12 : vector<10x40xf32>
    %22 = arith.subf %20, %21 : vector<10x40xf32>
    %23 = arith.mulf %5, %8 : vector<16x64xf32>
    %cst_16 = arith.constant dense<0.000000e+00> : vector<16x40xf32>
    %24 = tpu.matmul %23, %1, %cst_16 {dimension_numbers = #tpu.dot_dimension_numbers<[1], [0], [0], [1], [0, 0, 1, 1], [], []>, precision = #tpu.contract_precision<fp32>} : vector<16x64xf32>, vector<64x40xf32>, vector<16x40xf32> -> vector<16x40xf32>
    %cst_17 = arith.constant dense<0.000000e+00> : vector<10x40xf32>
    %25 = tpu.matmul %0, %24, %cst_17 {dimension_numbers = #tpu.dot_dimension_numbers<[1], [0], [0], [1], [0, 0, 1, 1], [], []>, precision = #tpu.contract_precision<fp32>} : vector<10x16xf32>, vector<16x40xf32>, vector<10x40xf32> -> vector<10x40xf32>
    %26 = arith.mulf %10, %12 : vector<10x40xf32>
    %27 = arith.subf %25, %26 : vector<10x40xf32>
    %cst_18 = arith.constant 2.000000e+00 : f32
    %28 = vector.broadcast %cst_18 : f32 to vector<10x40xf32>
    %29 = arith.mulf %28, %10 : vector<10x40xf32>
    %30 = arith.mulf %29, %12 : vector<10x40xf32>
    %cst_19 = arith.constant 9.99999974E-5 : f32
    %31 = vector.broadcast %cst_19 : f32 to vector<10x40xf32>
    %32 = arith.addf %30, %31 : vector<10x40xf32>
    %cst_20 = arith.constant 2.04166675 : f32
    %33 = vector.broadcast %cst_20 : f32 to vector<10x40xf32>
    %34 = arith.mulf %33, %27 : vector<10x40xf32>
    %cst_21 = arith.constant 8.99999984E-4 : f32
    %35 = vector.broadcast %cst_21 : f32 to vector<10x40xf32>
    %36 = arith.addf %34, %35 : vector<10x40xf32>
    %37 = arith.mulf %32, %36 : vector<10x40xf32>
    %38 = arith.mulf %10, %10 : vector<10x40xf32>
    %39 = arith.mulf %12, %12 : vector<10x40xf32>
    %40 = arith.addf %38, %39 : vector<10x40xf32>
    %cst_22 = arith.constant 9.99999974E-5 : f32
    %41 = vector.broadcast %cst_22 : f32 to vector<10x40xf32>
    %42 = arith.addf %40, %41 : vector<10x40xf32>
    %43 = arith.addf %17, %22 : vector<10x40xf32>
    %cst_23 = arith.constant 1.02083337 : f32
    %44 = vector.broadcast %cst_23 : f32 to vector<10x40xf32>
    %45 = arith.mulf %44, %43 : vector<10x40xf32>
    %cst_24 = arith.constant 8.99999984E-4 : f32
    %46 = vector.broadcast %cst_24 : f32 to vector<10x40xf32>
    %47 = arith.addf %45, %46 : vector<10x40xf32>
    %48 = arith.mulf %42, %47 : vector<10x40xf32>
    %49 = tpu.reciprocal %48 {approx = true} : vector<10x40xf32> -> vector<10x40xf32>
    %50 = arith.mulf %48, %49 : vector<10x40xf32>
    %cst_25 = arith.constant 2.000000e+00 : f32
    %51 = vector.broadcast %cst_25 : f32 to vector<10x40xf32>
    %52 = arith.subf %51, %50 : vector<10x40xf32>
    %53 = arith.mulf %49, %52 : vector<10x40xf32>
    %54 = arith.mulf %37, %53 : vector<10x40xf32>
    %cst_26 = arith.constant dense<0.000000e+00> : vector<40xf32>
    %55 = vector.multi_reduction <add>, %54, %cst_26 [0] : vector<10x40xf32> to vector<40xf32>
    %56 = vector.shape_cast %55 : vector<40xf32> to vector<1x40xf32>
    %cst_27 = arith.constant dense<0.000000e+00> : vector<1x4xf32>
    %57 = tpu.matmul %56, %2, %cst_27 {dimension_numbers = #tpu.dot_dimension_numbers<[1], [0], [0], [1], [0, 0, 1, 1], [], []>, precision = #tpu.contract_precision<fp32>} : vector<1x40xf32>, vector<40x4xf32>, vector<1x4xf32> -> vector<1x4xf32>
    %58 = arith.index_cast %c0_i32 : i32 to index
    %c0_28 = arith.constant 0 : index
    %c0_29 = arith.constant 0 : index
    %59 = vector.load %arg6[%58, %c0_28, %c0_29] : memref<1x1x4xf32, #tpu.memory_space<vmem>>, vector<1x1x4xf32>
    %60 = vector.shape_cast %59 : vector<1x1x4xf32> to vector<1x4xf32>
    %61 = vector.shape_cast %57 : vector<1x4xf32> to vector<1x1x4xf32>
    tpu.vector_store %arg6[%58, %c0_28, %c0_29], %61 {strides = array<i32>} : memref<1x1x4xf32, #tpu.memory_space<vmem>>, vector<1x1x4xf32>,
    %c1_i32 = arith.constant 1 : i32
    return
  }
  func.func @transform_0(%arg0: i32) -> (i32, i32, i32) {
    %c0_i32 = arith.constant 0 : i32
    %c0_i32_0 = arith.constant 0 : i32
    %c0_i32_1 = arith.constant 0 : i32
    return %arg0, %c0_i32, %c0_i32_0 : i32, i32, i32
  }
  func.func @transform_1(%arg0: i32) -> (i32, i32, i32) {
    %c0_i32 = arith.constant 0 : i32
    %c0_i32_0 = arith.constant 0 : i32
    %c0_i32_1 = arith.constant 0 : i32
    return %arg0, %c0_i32, %c0_i32_0 : i32, i32, i32
  }
  func.func @transform_2(%arg0: i32) -> (i32, i32) {
    %c0_i32 = arith.constant 0 : i32
    %c0_i32_0 = arith.constant 0 : i32
    %c0_i32_1 = arith.constant 0 : i32
    return %c0_i32, %c0_i32_0 : i32, i32
  }
  func.func @transform_3(%arg0: i32) -> (i32, i32) {
    %c0_i32 = arith.constant 0 : i32
    %c0_i32_0 = arith.constant 0 : i32
    %c0_i32_1 = arith.constant 0 : i32
    return %c0_i32, %c0_i32_0 : i32, i32
  }
  func.func @transform_4(%arg0: i32) -> (i32, i32) {
    %c0_i32 = arith.constant 0 : i32
    %c0_i32_0 = arith.constant 0 : i32
    %c0_i32_1 = arith.constant 0 : i32
    return %c0_i32, %c0_i32_0 : i32, i32
  }
  func.func @transform_5(%arg0: i32) -> (i32, i32, i32) {
    %c0_i32 = arith.constant 0 : i32
    %c0_i32_0 = arith.constant 0 : i32
    %c0_i32_1 = arith.constant 0 : i32
    return %arg0, %c0_i32, %c0_i32_0 : i32, i32, i32
  }
}

module attributes {stable_mosaic.version = 11 : i64} {
  func.func @_ssim_block_kernel(%arg0: i32, %arg1: memref<1x16x64xf32, #tpu.memory_space<vmem>>, %arg2: memref<1x16x64xf32, #tpu.memory_space<vmem>>, %arg3: memref<10x16xf32, #tpu.memory_space<vmem>>, %arg4: memref<64x40xf32, #tpu.memory_space<vmem>>, %arg5: memref<40x4xf32, #tpu.memory_space<vmem>>, %arg6: memref<1x1x4xf32, #tpu.memory_space<vmem>>) attributes {dimension_semantics = [#tpu.dimension_semantics<parallel>], iteration_bounds = array<i64: 2>, scalar_prefetch = 0 : i64, scratch_operands = 0 : i64, tpu.core_type = #tpu.core_type<tc>, window_params = [{transform_indices = @transform_0, window_bounds = array<i64: 1, 16, 64>}, {transform_indices = @transform_1, window_bounds = array<i64: 1, 16, 64>}, {pipeline_mode = #tpu.pipeline_mode<synchronous>, transform_indices = @transform_2, window_bounds = array<i64: 10, 16>}, {pipeline_mode = #tpu.pipeline_mode<synchronous>, transform_indices = @transform_3, window_bounds = array<i64: 64, 40>}, {pipeline_mode = #tpu.pipeline_mode<synchronous>, transform_indices = @transform_4, window_bounds = array<i64: 40, 4>}, {transform_indices = @transform_5, window_bounds = array<i64: 1, 1, 4>}]} {
    %c0 = arith.constant 0 : index
    %c0_0 = arith.constant 0 : index
    %0 = vector.load %arg3[%c0, %c0_0] : memref<10x16xf32, #tpu.memory_space<vmem>>, vector<10x16xf32>
    %c0_1 = arith.constant 0 : index
    %c0_2 = arith.constant 0 : index
    %1 = vector.load %arg4[%c0_1, %c0_2] : memref<64x40xf32, #tpu.memory_space<vmem>>, vector<64x40xf32>
    %c0_3 = arith.constant 0 : index
    %c0_4 = arith.constant 0 : index
    %2 = vector.load %arg5[%c0_3, %c0_4] : memref<40x4xf32, #tpu.memory_space<vmem>>, vector<40x4xf32>
    %c0_i32 = arith.constant 0 : i32
    %3 = arith.index_cast %c0_i32 : i32 to index
    %c0_5 = arith.constant 0 : index
    %c0_6 = arith.constant 0 : index
    %4 = vector.load %arg1[%3, %c0_5, %c0_6] : memref<1x16x64xf32, #tpu.memory_space<vmem>>, vector<1x16x64xf32>
    %5 = vector.shape_cast %4 : vector<1x16x64xf32> to vector<16x64xf32>
    %6 = arith.index_cast %c0_i32 : i32 to index
    %c0_7 = arith.constant 0 : index
    %c0_8 = arith.constant 0 : index
    %7 = vector.load %arg2[%6, %c0_7, %c0_8] : memref<1x16x64xf32, #tpu.memory_space<vmem>>, vector<1x16x64xf32>
    %8 = vector.shape_cast %7 : vector<1x16x64xf32> to vector<16x64xf32>
    %cst = arith.constant dense<0.000000e+00> : vector<16x40xf32>
    %9 = tpu.matmul %5, %1, %cst {dimension_numbers = #tpu.dot_dimension_numbers<[1], [0], [0], [1], [0, 0, 1, 1], [], []>} : vector<16x64xf32>, vector<64x40xf32>, vector<16x40xf32> -> vector<16x40xf32>
    %cst_9 = arith.constant dense<0.000000e+00> : vector<10x40xf32>
    %10 = tpu.matmul %0, %9, %cst_9 {dimension_numbers = #tpu.dot_dimension_numbers<[1], [0], [0], [1], [0, 0, 1, 1], [], []>} : vector<10x16xf32>, vector<16x40xf32>, vector<10x40xf32> -> vector<10x40xf32>
    %cst_10 = arith.constant dense<0.000000e+00> : vector<16x40xf32>
    %11 = tpu.matmul %8, %1, %cst_10 {dimension_numbers = #tpu.dot_dimension_numbers<[1], [0], [0], [1], [0, 0, 1, 1], [], []>} : vector<16x64xf32>, vector<64x40xf32>, vector<16x40xf32> -> vector<16x40xf32>
    %cst_11 = arith.constant dense<0.000000e+00> : vector<10x40xf32>
    %12 = tpu.matmul %0, %11, %cst_11 {dimension_numbers = #tpu.dot_dimension_numbers<[1], [0], [0], [1], [0, 0, 1, 1], [], []>} : vector<10x16xf32>, vector<16x40xf32>, vector<10x40xf32> -> vector<10x40xf32>
    %13 = arith.mulf %5, %5 : vector<16x64xf32>
    %cst_12 = arith.constant dense<0.000000e+00> : vector<16x40xf32>
    %14 = tpu.matmul %13, %1, %cst_12 {dimension_numbers = #tpu.dot_dimension_numbers<[1], [0], [0], [1], [0, 0, 1, 1], [], []>} : vector<16x64xf32>, vector<64x40xf32>, vector<16x40xf32> -> vector<16x40xf32>
    %cst_13 = arith.constant dense<0.000000e+00> : vector<10x40xf32>
    %15 = tpu.matmul %0, %14, %cst_13 {dimension_numbers = #tpu.dot_dimension_numbers<[1], [0], [0], [1], [0, 0, 1, 1], [], []>} : vector<10x16xf32>, vector<16x40xf32>, vector<10x40xf32> -> vector<10x40xf32>
    %16 = arith.mulf %10, %10 : vector<10x40xf32>
    %17 = arith.subf %15, %16 : vector<10x40xf32>
    %18 = arith.mulf %8, %8 : vector<16x64xf32>
    %cst_14 = arith.constant dense<0.000000e+00> : vector<16x40xf32>
    %19 = tpu.matmul %18, %1, %cst_14 {dimension_numbers = #tpu.dot_dimension_numbers<[1], [0], [0], [1], [0, 0, 1, 1], [], []>} : vector<16x64xf32>, vector<64x40xf32>, vector<16x40xf32> -> vector<16x40xf32>
    %cst_15 = arith.constant dense<0.000000e+00> : vector<10x40xf32>
    %20 = tpu.matmul %0, %19, %cst_15 {dimension_numbers = #tpu.dot_dimension_numbers<[1], [0], [0], [1], [0, 0, 1, 1], [], []>} : vector<10x16xf32>, vector<16x40xf32>, vector<10x40xf32> -> vector<10x40xf32>
    %21 = arith.mulf %12, %12 : vector<10x40xf32>
    %22 = arith.subf %20, %21 : vector<10x40xf32>
    %23 = arith.mulf %5, %8 : vector<16x64xf32>
    %cst_16 = arith.constant dense<0.000000e+00> : vector<16x40xf32>
    %24 = tpu.matmul %23, %1, %cst_16 {dimension_numbers = #tpu.dot_dimension_numbers<[1], [0], [0], [1], [0, 0, 1, 1], [], []>} : vector<16x64xf32>, vector<64x40xf32>, vector<16x40xf32> -> vector<16x40xf32>
    %cst_17 = arith.constant dense<0.000000e+00> : vector<10x40xf32>
    %25 = tpu.matmul %0, %24, %cst_17 {dimension_numbers = #tpu.dot_dimension_numbers<[1], [0], [0], [1], [0, 0, 1, 1], [], []>} : vector<10x16xf32>, vector<16x40xf32>, vector<10x40xf32> -> vector<10x40xf32>
    %26 = arith.mulf %10, %12 : vector<10x40xf32>
    %27 = arith.subf %25, %26 : vector<10x40xf32>
    %cst_18 = arith.constant 2.000000e+00 : f32
    %28 = vector.broadcast %cst_18 : f32 to vector<10x40xf32>
    %29 = arith.mulf %28, %10 : vector<10x40xf32>
    %30 = arith.mulf %29, %12 : vector<10x40xf32>
    %cst_19 = arith.constant 9.99999974E-5 : f32
    %31 = vector.broadcast %cst_19 : f32 to vector<10x40xf32>
    %32 = arith.addf %30, %31 : vector<10x40xf32>
    %cst_20 = arith.constant 2.04166675 : f32
    %33 = vector.broadcast %cst_20 : f32 to vector<10x40xf32>
    %34 = arith.mulf %33, %27 : vector<10x40xf32>
    %cst_21 = arith.constant 8.99999984E-4 : f32
    %35 = vector.broadcast %cst_21 : f32 to vector<10x40xf32>
    %36 = arith.addf %34, %35 : vector<10x40xf32>
    %37 = arith.mulf %32, %36 : vector<10x40xf32>
    %38 = arith.mulf %10, %10 : vector<10x40xf32>
    %39 = arith.mulf %12, %12 : vector<10x40xf32>
    %40 = arith.addf %38, %39 : vector<10x40xf32>
    %cst_22 = arith.constant 9.99999974E-5 : f32
    %41 = vector.broadcast %cst_22 : f32 to vector<10x40xf32>
    %42 = arith.addf %40, %41 : vector<10x40xf32>
    %43 = arith.addf %17, %22 : vector<10x40xf32>
    %cst_23 = arith.constant 1.02083337 : f32
    %44 = vector.broadcast %cst_23 : f32 to vector<10x40xf32>
    %45 = arith.mulf %44, %43 : vector<10x40xf32>
    %cst_24 = arith.constant 8.99999984E-4 : f32
    %46 = vector.broadcast %cst_24 : f32 to vector<10x40xf32>
    %47 = arith.addf %45, %46 : vector<10x40xf32>
    %48 = arith.mulf %42, %47 : vector<10x40xf32>
    %49 = tpu.reciprocal %48 {approx = true} : vector<10x40xf32> -> vector<10x40xf32>
    %50 = arith.mulf %48, %49 : vector<10x40xf32>
    %cst_25 = arith.constant 2.000000e+00 : f32
    %51 = vector.broadcast %cst_25 : f32 to vector<10x40xf32>
    %52 = arith.subf %51, %50 : vector<10x40xf32>
    %53 = arith.mulf %49, %52 : vector<10x40xf32>
    %54 = arith.mulf %37, %53 : vector<10x40xf32>
    %cst_26 = arith.constant dense<0.000000e+00> : vector<40xf32>
    %55 = vector.multi_reduction <add>, %54, %cst_26 [0] : vector<10x40xf32> to vector<40xf32>
    %56 = vector.shape_cast %55 : vector<40xf32> to vector<1x40xf32>
    %cst_27 = arith.constant dense<0.000000e+00> : vector<1x4xf32>
    %57 = tpu.matmul %56, %2, %cst_27 {dimension_numbers = #tpu.dot_dimension_numbers<[1], [0], [0], [1], [0, 0, 1, 1], [], []>} : vector<1x40xf32>, vector<40x4xf32>, vector<1x4xf32> -> vector<1x4xf32>
    %58 = arith.index_cast %c0_i32 : i32 to index
    %c0_28 = arith.constant 0 : index
    %c0_29 = arith.constant 0 : index
    %59 = vector.load %arg6[%58, %c0_28, %c0_29] : memref<1x1x4xf32, #tpu.memory_space<vmem>>, vector<1x1x4xf32>
    %60 = vector.shape_cast %59 : vector<1x1x4xf32> to vector<1x4xf32>
    %61 = vector.shape_cast %57 : vector<1x4xf32> to vector<1x1x4xf32>
    tpu.vector_store %arg6[%58, %c0_28, %c0_29], %61 {strides = array<i32>} : memref<1x1x4xf32, #tpu.memory_space<vmem>>, vector<1x1x4xf32>,
    %c1_i32 = arith.constant 1 : i32
    return
  }
  func.func @transform_0(%arg0: i32) -> (i32, i32, i32) {
    %c0_i32 = arith.constant 0 : i32
    %c0_i32_0 = arith.constant 0 : i32
    %c0_i32_1 = arith.constant 0 : i32
    return %arg0, %c0_i32, %c0_i32_0 : i32, i32, i32
  }
  func.func @transform_1(%arg0: i32) -> (i32, i32, i32) {
    %c0_i32 = arith.constant 0 : i32
    %c0_i32_0 = arith.constant 0 : i32
    %c0_i32_1 = arith.constant 0 : i32
    return %arg0, %c0_i32, %c0_i32_0 : i32, i32, i32
  }
  func.func @transform_2(%arg0: i32) -> (i32, i32) {
    %c0_i32 = arith.constant 0 : i32
    %c0_i32_0 = arith.constant 0 : i32
    %c0_i32_1 = arith.constant 0 : i32
    return %c0_i32, %c0_i32_0 : i32, i32
  }
  func.func @transform_3(%arg0: i32) -> (i32, i32) {
    %c0_i32 = arith.constant 0 : i32
    %c0_i32_0 = arith.constant 0 : i32
    %c0_i32_1 = arith.constant 0 : i32
    return %c0_i32, %c0_i32_0 : i32, i32
  }
  func.func @transform_4(%arg0: i32) -> (i32, i32) {
    %c0_i32 = arith.constant 0 : i32
    %c0_i32_0 = arith.constant 0 : i32
    %c0_i32_1 = arith.constant 0 : i32
    return %c0_i32, %c0_i32_0 : i32, i32
  }
  func.func @transform_5(%arg0: i32) -> (i32, i32, i32) {
    %c0_i32 = arith.constant 0 : i32
    %c0_i32_0 = arith.constant 0 : i32
    %c0_i32_1 = arith.constant 0 : i32
    return %arg0, %c0_i32, %c0_i32_0 : i32, i32, i32
  }
}

</mosaic_0001>

<bundles_post_ra>
// kernel: tpu_custom_call.1
= control target key start
LH: loop header
LB: loop body
LE: loop exit
PB: predicated region body
PF: predicated region fallthrough
CT: control target
= control target key end

     0   :  { %10 = vsyncpa [#allocation3], 0  ;;  %s9003_s0 = inlined_call_operand.vmem [shape: f32[2,16,64], index: 0, kind: input, shape index: {}]   ;;  %s9004_s1 = inlined_call_operand.vmem [shape: f32[2,16,64], index: 1, kind: input, shape index: {}]   ;;  %s9005_s2 = inlined_call_operand.vmem [shape: f32[10,16], index: 2, kind: input, shape index: {}]   ;;  %s9006_s3 = inlined_call_operand.vmem [shape: f32[64,40], index: 3, kind: input, shape index: {}]   ;;  %s9007_s4 = inlined_call_operand.vmem [shape: f32[40,4], index: 4, kind: input, shape index: {}]   ;;  %s9008_s5 = inlined_call_operand.hbm [shape: f32[2,1,4], index: 5, kind: output, shape index: {}]  }
   0x1   :  { %12 = vsyncpa [#allocation3 + $0x1], 0  ;;  %s7826_s18 = smov 0   ;;  %s7828_s19 = smov 0  }
   0x2   :  { %s7830_s20 = smov 0   ;;  %s7832_s21 = smov 0  }
   0x3 LB: > { %s7847_s22 = sadd.s32 4294967295, %s7791_s21   ;;  %s6355_s23 = sadd.s32 4294967294, %s7791_s21   ;;  %s7791_s21 = sphi %s7832_s21, %s9076_s21   ;;  %s7787_s20 = sphi %s7830_s20, %s9075_s20   ;;  %s7783_s19 = sphi %s7828_s19, %s9074_s19   ;;  %s7779_s18 = sphi %s7826_s18, %s9073_s18  }
   0x4   : > { %s7851_s24 = sadd.s32 1, %s7791_s21   ;;  %s140_s25 = sadd.s32 1, %s7787_s20 }
   0x5   : > { %s137_s26 = ssub.s32 %s7791_s21, %s7851_s24  ;;  %p150_p0 = scmp.ne.s32.totalorder %s7787_s20, %s7783_s19 }
   0x6   : > { %p138_p1 = scmp.eq.s32.totalorder %s137_s26, 0  ;;  %p151_p2 = scmp.eq.s32.totalorder %s7847_s22, 1 }
   0x7   : > { %p156_p3 = scmp.ne.s32.totalorder %s7783_s19, %s7779_s18  ;;  %p157_p4 = scmp.eq.s32.totalorder %s6355_s23, 1 }
   0x8   : > { %s7862_s27 = scalar_select %p138_p1, %s7787_s20, %s140_s25  }
   0x9   : > { %p7864_p5 = por %p151_p2, %p150_p0  ;;  %p7868_p6 = por %p157_p4, %p156_p3 }
   0xa   : > { %p6358_p7 = scmp.ge.s32.totalorder %s7791_s21, 1  ;;  %p200_p8 = scmp.lt.s32.totalorder %s7791_s21, 3 }
   0xc   : > { %p201_p9 = pnand %p6358_p7, %p200_p8 }
   0xe   : > { %204 = sbr.rel (%p201_p9) target bundleno = 1861 (0x745), region = 40 }
  0x13   : > { %v251_v0 = vld [vmem:[%s9006_s3 + $0x38] sm:$0xff]  ;;  %v250_v1 = vld [vmem:[%s9006_s3 + $0x30] sm:$0xff]  ;;  %v249_v2 = vld [vmem:[%s9006_s3 + $0x28] sm:$0xff]  ;;  %p232_p10 = scmp.lt.s32.totalorder %s7847_s22, 1  ;;  %vm261_vm0 = vcmask 523264   ;;  %vm848_vm1 = vcmask 130048  }
  0x14   : > { %v7884_v3 = vand.u32 4294901760, %v251_v0  ;;  %v7886_v4 = vand.u32 4294901760, %v250_v1  ;;  %v7888_v5 = vand.u32 4294901760, %v249_v2  ;;  %v248_v6 = vld [vmem:[%s9006_s3 + $0x20] sm:$0xff]  ;;  %v247_v7 = vld [vmem:[%s9006_s3 + $0x18] sm:$0xff]  ;;  %v246_v8 = vld [vmem:[%s9006_s3 + $0x10] sm:$0xff] }
  0x15   : > { %v7899_v9 = vand.u32 4294901760, %v248_v6  ;;  %v7901_v10 = vand.u32 4294901760, %v247_v7  ;;  %v7903_v11 = vand.u32 4294901760, %v246_v8  ;;  %v245_v12 = vld [vmem:[%s9006_s3 + $0x8] sm:$0xff]  ;;  %v244_v13 = vld [vmem:[%s9006_s3] sm:$0xff]  ;;  %s7912_s30 = scalar_select %p232_p10, %s7847_s22, 1 }
  0x16   : > { %6824 = vmatprep.subr.mxu0 %v7884_v3  ;;  %v7916_v14 = vsub.f32 %v251_v0, %v7884_v3  ;;  %v7919_v15 = vsub.f32 %v250_v1, %v7886_v4  ;;  %v7921_v16 = vand.u32 4294901760, %v245_v12  ;;  %v7924_v17 = vsub.f32 %v249_v2, %v7888_v5  ;;  %v242_v62 = vld [vmem:[%s9005_s2] sm:$0xff]  ;;  %s230_s11 = sand.u32 1, %s7783_s19   ;;  %s6363_s12 = sshll.u32 %s7847_s22, 4 }
  0x17   : > { %6825 = vmatpush3.msra.mxu0 %v7884_v3  ;;  %v7928_v18 = vsub.f32 %v248_v6, %v7899_v9  ;;  %s6366_s6 = sshll.u32 %s7912_s30, 4  ;;  %v7932_v19 = vsub.f32 %v247_v7, %v7901_v10  ;;  %v7935_v20 = vsub.f32 %v246_v8, %v7903_v11  ;;  %v7947_v24 = vand.u32 4294901760, %v244_v13  ;;  %s231_s13 = scalar_lea.vmem [#allocation2], %s230_s11 }
  0x18   : > { %6826 = vmatprep.subr.mxu0 %v7886_v4  ;;  %v7939_v21 = vand.u32 4294901760, %v7916_v14  ;;  %v7942_v22 = vand.u32 4294901760, %v7919_v15  ;;  %v7945_v23 = vand.u32 4294901760, %v7924_v17  ;;  %s7954_s9 = scalar_lea.vmem %s9003_s0, %s6366_s6  ;;  %v7967_v28 = vsub.f32 %v245_v12, %v7921_v16  ;;  %v243_v12 = vld [vmem:[%s9005_s2 + $0x8] sm:$0x3]  ;;  %s8179_s16 = scalar_lea.vmem %s9004_s1, %s6366_s6 }
  0x19   : > { %6827 = vmatpush3.msra.mxu0 %v7886_v4  ;;  %v7958_v25 = vand.u32 4294901760, %v7928_v18  ;;  %v7961_v26 = vld [vmem:[%s7954_s9] sm:$0xff]  ;;  %v7964_v27 = vand.u32 4294901760, %v7932_v19  ;;  %v7980_v33 = vld [vmem:[%s7954_s9 + $0x8] sm:$0xff]  ;;  %v7985_v35 = vand.u32 4294901760, %v7935_v20  ;;  %v7995_v39 = vsub.f32 %v244_v13, %v7947_v24  ;;  %s6288_s14 = sshll.u32 %s231_s13, 4  ;;  %s6286_s17 = scalar_lea.hbm %s9008_s5, %s6363_s12  ;;  %s6289_s14 = int_to_ptr.vmem [resolvable:$true] %s6288_s14 }
  0x1a   : > { %6828 = vmatprep.subr.mxu0 %v7888_v5  ;;  %v381_v29 = vsub.f32 %v7916_v14, %v7939_v21  ;;  %v388_v30 = vsub.f32 %v7919_v15, %v7942_v22  ;;  %v395_v31 = vsub.f32 %v7924_v17, %v7945_v23  ;;  %v263_v32 = vsel %vm261_vm0, %v7961_v26, 0  ;;  %s6276_s23 = scalar_lea.sflag [#allocation3], %s230_s11  ;;  %s7731_s25 = scalar_lea.vmem %s6289_s14, 16 }
  0x1b   : > { %6829 = vmatpush3.msra.mxu0 %v7888_v5  ;;  %v7982_v34 = vand.u32 4294901760, %v263_v32  ;;  %v402_v38 = vsub.f32 %v7928_v18, %v7958_v25  ;;  %v409_v42 = vsub.f32 %v7932_v19, %v7964_v27  ;;  %v266_v43 = vsel %vm261_vm0, %v7980_v33, 0  ;;  %p7732_p11 = scmp.ne.s32.totalorder %s6289_s14, %s7731_s25  ;;  %s7795_s26 = smov [#allocation2]  }
  0x1c   : > { %6830 = vmatprep.subr.mxu0 %v7899_v9  ;;  %v7988_v36 = vand.u32 4294901760, %v381_v29  ;;  %v7990_v37 = vand.u32 4294901760, %v388_v30  ;;  %v8004_v41 = vand.u32 4294901760, %v395_v31  ;;  %v8011_v44 = vand.u32 4294901760, %v7967_v28  ;;  %s7735_s22 = sshll.u32 %s7795_s26, 4  ;;  %s7736_s22 = int_to_ptr.vmem [resolvable:$false] %s7735_s22 }
  0x1d   : > { %6831 = vmatpush3.msra.mxu0 %v7899_v9  ;;  %v7999_v40 = vsub.f32 %v263_v32, %v7982_v34  ;;  %6859 = vmatprep.mubr.f32.mxu1 %v7982_v34  ;;  %v8016_v46 = vand.u32 4294901760, %v266_v43  ;;  %v8020_v47 = vand.u32 4294901760, %v402_v38  ;;  %v416_v48 = vsub.f32 %v7935_v20, %v7985_v35  ;;  %p7733_p12 = pnand %p7732_p11, %p7864_p5  ;;  %s7737_s30 = scalar_lea.vmem %s7736_s22, 32 }
  0x1e   : > { %6832 = vmatprep.subr.mxu0 %v7901_v10  ;;  %6843 = vmatprep.subr.mxu1 %v7988_v36  ;;  %9029 = vst [vmem:[#allocation5_spill] sm:$0xff] %v8011_v44  ;;  %v8025_v49 = vand.u32 4294901760, %v7995_v39  ;;  %v8037_v52 = vand.u32 4294901760, %v409_v42  ;;  %v423_v53 = vsub.f32 %v7967_v28, %v8011_v44  ;;  %v850_v63 = vsel %vm848_vm1, %v242_v62, 0  ;;  %p7738_p0 = scmp.lt.s32.totalorder %s6289_s14, %s7736_s22  ;;  %p7739_p1 = scmp.lt.s32.totalorder %s7737_s30, %s7731_s25 }
  0x1f   : > { %6833 = vmatpush3.msra.mxu0 %v7901_v10  ;;  %6844 = vmatpush3.msra.mxu1 %v7988_v36  ;;  %v343_v45 = vand.u32 4294901760, %v7999_v40  ;;  %v8033_v51 = vsub.f32 %v266_v43, %v8016_v46  ;;  %v8046_v56 = vand.u32 4294901760, %v416_v48  ;;  %v8145_v0 = vand.u32 4294901760, %v850_v63  ;;  %p7734_p13 = pneg %p7733_p12 }
  0x20   : > { %6834 = vmatprep.subr.mxu0 %v7903_v11  ;;  %6845 = vmatprep.subr.mxu1 %v7990_v37  ;;  %9030 = vst [vmem:[#allocation6_spill] sm:$0xff] %v8025_v49  ;;  %v430_v57 = vsub.f32 %v7995_v39, %v8025_v49  ;;  %v8056_v59 = vand.u32 4294901760, %v423_v53  ;;  %v853_v30 = vsel %vm848_vm1, %v243_v12, 0  ;;  %vm7794_vm2 = vmmov 0   ;;  %p7740_p2 = por %p7739_p1, %p7738_p0 }
  0x21   : > { %6835 = vmatpush3.msra.mxu0 %v7903_v11  ;;  %6846 = vmatpush3.msra.mxu1 %v7990_v37  ;;  %v344_v50 = vsub.f32 %v7999_v40, %v343_v45  ;;  %v353_v55 = vand.u32 4294901760, %v8033_v51  ;;  %v8148_v1 = vsub.f32 %v850_v63, %v8145_v0  ;;  %v8162_v32 = vand.u32 4294901760, %v853_v30 }
  0x22   : > { %6836 = vmatprep.subr.mxu0 %v7921_v16  ;;  %6847 = vmatprep.subr.mxu1 %v8004_v41  ;;  %v8061_v61 = vand.u32 4294901760, %v430_v57  ;;  %vm5763_vm3 = vcmask 320512   ;;  %vm5761_vm4 = vcmask 326656   ;;  %vm6273_vm5 = vcmask 24576   ;;  %p7741_p3 = pnand %p7740_p2, %p7734_p13 }
  0x23   : > { %6837 = vmatpush3.msra.mxu0 %v7921_v16  ;;  %6848 = vmatpush3.msra.mxu1 %v8004_v41  ;;  %v345_v54 = vand.u32 4294901760, %v344_v50  ;;  %v354_v58 = vsub.f32 %v8033_v51, %v353_v55  ;;  %v8152_v2 = vand.u32 4294901760, %v8148_v1  ;;  %v8165_v43 = vsub.f32 %v853_v30, %v8162_v32 }
  0x24   : > { %6838 = vmatprep.subr.mxu0 %v7947_v24  ;;  %6849 = vmatprep.subr.mxu1 %v8020_v47 }
  0x25   : > { %6839 = vmatpush3.msra.mxu0 %v7947_v24  ;;  %6850 = vmatpush3.msra.mxu1 %v8020_v47  ;;  %v355_v60 = vand.u32 4294901760, %v354_v58  ;;  %v925_v6 = vsub.f32 %v8148_v1, %v8152_v2 }
  0x26   : > { %6840 = vmatprep.mubr.f32.mxu0 %v345_v54  ;;  %6851 = vmatprep.subr.mxu1 %v8037_v52  ;;  %v8168_v54 = vand.u32 4294901760, %v8165_v43 }
  0x27   : > { %6862 = vmatprep.subr.mxu0 %v7916_v14  ;;  %6852 = vmatpush3.msra.mxu1 %v8037_v52  ;;  %v8156_v7 = vand.u32 4294901760, %v925_v6 }
  0x28   : > { %6853 = vmatprep.subr.mxu1 %v8046_v56  ;;  %6841 = vmatmul.mubr.f32.vlgmr.msra.gmra.mxu0 %v355_v60  ;;  %v935_v6 = vsub.f32 %v8165_v43, %v8168_v54 }
  0x29   : > { %6854 = vmatpush3.msra.mxu1 %v8046_v56  ;;  %6863 = vmatpush3.msra.mxu0 %v7916_v14  ;;  %9031 = vst [vmem:[#allocation7_spill] sm:$0xff] %v8156_v7 }
  0x2a   : > { %6855 = vmatprep.subr.mxu1 %v8056_v59  ;;  %6864 = vmatprep.subr.mxu0 %v7919_v15 }
  0x2b   : > { %6856 = vmatpush3.msra.mxu1 %v8056_v59  ;;  %6865 = vmatpush3.msra.mxu0 %v7919_v15 }
  0x2c   : > { %6857 = vmatprep.subr.mxu1 %v8061_v61  ;;  %6866 = vmatprep.subr.mxu0 %v7924_v17 }
  0x2d   : > { %6858 = vmatpush3.msra.mxu1 %v8061_v61  ;;  %6867 = vmatpush3.msra.mxu0 %v7924_v17 }
  0x2e   : > { %6860 = vmatmul.mubr.f32.vlgmr.msra.gmra.mxu1 %v8016_v46  ;;  %6868 = vmatprep.subr.mxu0 %v7928_v18 }
  0x2f   : > { %6881 = vmatprep.subr.mxu1 %v7884_v3  ;;  %6869 = vmatpush3.msra.mxu0 %v7928_v18 }
  0x30   : > { %6882 = vmatpush3.msra.mxu1 %v7884_v3  ;;  %6870 = vmatprep.subr.mxu0 %v7932_v19 }
  0x31   : > { %6883 = vmatprep.subr.mxu1 %v7886_v4  ;;  %6871 = vmatpush3.msra.mxu0 %v7932_v19 }
  0x32   : > { %6884 = vmatpush3.msra.mxu1 %v7886_v4  ;;  %6872 = vmatprep.subr.mxu0 %v7935_v20 }
  0x33   : > { %6885 = vmatprep.subr.mxu1 %v7888_v5  ;;  %6873 = vmatpush3.msra.mxu0 %v7935_v20 }
  0x34   : > { %6886 = vmatpush3.msra.mxu1 %v7888_v5  ;;  %6874 = vmatprep.subr.mxu0 %v7967_v28 }
  0x35   : > { %6887 = vmatprep.subr.mxu1 %v7899_v9  ;;  %6875 = vmatpush3.msra.mxu0 %v7967_v28 }
  0x36   : > { %6878 = vmatprep.mubr.f32.mxu0 %v7999_v40  ;;  %6876 = vmatprep.subr.mxu0 %v7995_v39 }
  0x37   : > { %6888 = vmatpush3.msra.mxu1 %v7899_v9  ;;  %6877 = vmatpush3.msra.mxu0 %v7995_v39 }
  0x38   : > { %6889 = vmatprep.subr.mxu1 %v7901_v10  ;;  %6879 = vmatmul.mubr.f32.vlgmr.msra.gmra.mxu0 %v8033_v51 }
  0x39   : > { %6900 = vmatprep.subr.mxu0 %v7939_v21  ;;  %6890 = vmatpush3.msra.mxu1 %v7901_v10 }
  0x3a   : > { %6901 = vmatpush3.msra.mxu0 %v7939_v21  ;;  %6891 = vmatprep.subr.mxu1 %v7903_v11 }
  0x3b   : > { %6902 = vmatprep.subr.mxu0 %v7942_v22  ;;  %6892 = vmatpush3.msra.mxu1 %v7903_v11 }
  0x3c   : > { %6903 = vmatpush3.msra.mxu0 %v7942_v22  ;;  %6893 = vmatprep.subr.mxu1 %v7921_v16 }
  0x3d   : > { %6904 = vmatprep.subr.mxu0 %v7945_v23  ;;  %6894 = vmatpush3.msra.mxu1 %v7921_v16 }
  0x3e   : > { %6905 = vmatpush3.msra.mxu0 %v7945_v23  ;;  %6895 = vmatprep.subr.mxu1 %v7947_v24 }
  0x3f   : > { %6906 = vmatprep.subr.mxu0 %v7958_v25  ;;  %6896 = vmatpush3.msra.mxu1 %v7947_v24 }
  0x40   : > { %6897 = vmatprep.mubr.f32.mxu1 %v343_v45  ;;  %6907 = vmatpush3.msra.mxu0 %v7958_v25 }
  0x41   : > { %6898 = vmatmul.mubr.f32.vlgmr.msra.gmra.mxu1 %v353_v55  ;;  %6908 = vmatprep.subr.mxu0 %v7964_v27 }
  0x42   : > { %6919 = vmatprep.subr.mxu1 %v7884_v3  ;;  %6909 = vmatpush3.msra.mxu0 %v7964_v27 }
  0x43   : > { %6920 = vmatpush3.msra.mxu1 %v7884_v3  ;;  %6910 = vmatprep.subr.mxu0 %v7985_v35 }
  0x44   : > { %6921 = vmatprep.subr.mxu1 %v7886_v4  ;;  %6911 = vmatpush3.msra.mxu0 %v7985_v35 }
  0x45   : > { %6922 = vmatpush3.msra.mxu1 %v7886_v4  ;;  %6912 = vmatprep.subr.mxu0 %v8011_v44 }
  0x46   : > { %6923 = vmatprep.subr.mxu1 %v7888_v5  ;;  %6913 = vmatpush3.msra.mxu0 %v8011_v44 }
  0x47   : > { %6924 = vmatpush3.msra.mxu1 %v7888_v5  ;;  %6914 = vmatprep.subr.mxu0 %v8025_v49 }
  0x48   : > { %6925 = vmatprep.subr.mxu1 %v7899_v9  ;;  %6915 = vmatpush3.msra.mxu0 %v8025_v49 }
  0x49   : > { %6916 = vmatprep.mubr.f32.mxu0 %v7982_v34  ;;  %6926 = vmatpush3.msra.mxu1 %v7899_v9 }
  0x4a   : > { %6917 = vmatmul.mubr.f32.vlgmr.msra.gmra.mxu0 %v8016_v46  ;;  %6927 = vmatprep.subr.mxu1 %v7901_v10 }
  0x4b   : > { %6935 = vmatprep.mubr.f32.mxu1 %v7982_v34  ;;  %6928 = vmatpush3.msra.mxu1 %v7901_v10 }
  0x4c   : > { %6929 = vmatprep.subr.mxu1 %v7903_v11  ;;  %6942 = vmatprep.mubr.f32.mxu0 %v8156_v7 }
  0x4d   : > { %6930 = vmatpush3.msra.mxu1 %v7903_v11 }
  0x4e   : > { %6931 = vmatprep.subr.mxu1 %v7921_v16 }
  0x4f   : > { %6932 = vmatpush3.msra.mxu1 %v7921_v16 }
  0x50   : > { %6933 = vmatprep.subr.mxu1 %v7947_v24 }
  0x51   : > { %6934 = vmatpush3.msra.mxu1 %v7947_v24 }
  0x52   : > { %6936 = vmatmul.mubr.f32.vlgmr.msra.gmra.mxu1 %v8016_v46 }
  0x53   : > { %6949 = vmatprep.mubr.f32.mxu1 %v8145_v0 }
  0xe8   : > { %v6842_v8 = vpop.f32.mrf.mxu0 }
  0xea   : > { %v347_v13 = vpop.f32.mrf.mxu0 }
  0xee   : > { %v6861_v29 = vpop.f32.mrf.mxu1 }
  0xef   : > { %v475_v42 = vadd.f32 %v6861_v29, %v6842_v8 }
  0xf0   : > { %v468_v34 = vpop.f32.mrf.mxu1 }
  0xf1   : > { %v469_v46 = vadd.f32 %v468_v34, %v347_v13 }
  0xf8   : > { %v6880_v31 = vpop.f32.mrf.mxu0 }
  0xf9   : > { %v570_v48 = vadd.f32 %v6880_v31, %v475_v42  ;;  %v8172_v31 = vand.u32 4294901760, %v935_v6 }
  0xfa   : > { %v562_v38 = vpop.f32.mrf.mxu0 }
  0xfb   : > { %v563_v51 = vadd.f32 %v562_v38, %v469_v46 }
 0x101   : > { %v6899_v40 = vpop.f32.mrf.mxu1 }
 0x102   : > { %v659_v53 = vadd.f32 %v6899_v40, %v570_v48 }
 0x103   : > { %v650_v50 = vpop.f32.mrf.mxu1 }
 0x104   : > { %v651_v57 = vadd.f32 %v650_v50, %v563_v51  ;;  %v8187_v50 = vld [vmem:[%s8179_s16 + $0x8] sm:$0xff] }
 0x105   : > { %9033 = vst [vmem:[#allocation9_spill] sm:$0xff] %v8187_v50 }
 0x10a   : > { %v6918_v45 = vpop.f32.mrf.mxu0 }
 0x10b   : > { %v760_v58 = vadd.f32 %v6918_v45, %v659_v53  ;;  %v8184_v45 = vld [vmem:[%s8179_s16] sm:$0xff] }
 0x10c   : > { %v753_v55 = vpop.f32.mrf.mxu0  ;;  %9032 = vst [vmem:[#allocation8_spill] sm:$0xff] %v8184_v45  ;;  %v1358_v53 = vsel %vm261_vm0, %v8184_v45, 0 }
 0x10d   : > { %v754_v62 = vadd.f32 %v753_v55, %v651_v57  ;;  %v1361_v55 = vsel %vm261_vm0, %v8187_v50, 0  ;;  %v8195_v57 = vand.u32 4294901760, %v1358_v53 }
 0x112   : > { %v6937_v60 = vpop.f32.mrf.mxu1 }
 0x113   : > { %v845_v63 = vadd.f32 %v6937_v60, %v760_v58  ;;  %v8198_v58 = vand.u32 4294901760, %v1361_v55  ;;  %v8204_v60 = vsub.f32 %v1358_v53, %v8195_v57 }
 0x114   : > { %v838_v8 = vpop.f32.mrf.mxu1 }
 0x115   : > { %v884_v12 = vand.u32 4294901760, %v845_v63  ;;  %v839_v13 = vadd.f32 %v838_v8, %v754_v62  ;;  %v8209_v62 = vsub.f32 %v1361_v55, %v8198_v58 }
 0x117   : > { %v972_v29 = vsub.f32 %v845_v63, %v884_v12  ;;  %v887_v30 = vand.u32 4294901760, %v839_v13  ;;  %6938 = vmatprep.subr.mxu0 %v884_v12  ;;  %v1438_v63 = vand.u32 4294901760, %v8204_v60  ;;  %v1448_v6 = vand.u32 4294901760, %v8209_v62 }
 0x118   : > { %6939 = vmatpush3.msra.mxu0 %v884_v12 }
 0x119   : > { %v979_v34 = vsub.f32 %v839_v13, %v887_v30  ;;  %6940 = vmatprep.subr.mxu0 %v887_v30  ;;  %v973_v38 = vand.u32 4294901760, %v972_v29  ;;  %v1439_v8 = vsub.f32 %v8204_v60, %v1438_v63 }
 0x11a   : > { %6941 = vmatpush3.msra.mxu0 %v887_v30 }
 0x11b   : > { %6952 = vmatprep.subr.mxu0 %v972_v29  ;;  %6943 = vmatmul.mubr.f32.vlgmr.msra.gmra.mxu0 %v8172_v31  ;;  %v974_v40 = vsub.f32 %v972_v29, %v973_v38  ;;  %v980_v42 = vand.u32 4294901760, %v979_v34  ;;  %v1440_v13 = vand.u32 4294901760, %v1439_v8 }
 0x11c   : > { %6953 = vmatpush3.msra.mxu0 %v972_v29  ;;  %6956 = vmatprep.mubr.f32.mxu0 %v8148_v1 }
 0x11d   : > { %6954 = vmatprep.subr.mxu0 %v979_v34  ;;  %v975_v46 = vand.u32 4294901760, %v974_v40  ;;  %v981_v48 = vsub.f32 %v979_v34, %v980_v42 }
 0x11e   : > { %6955 = vmatpush3.msra.mxu0 %v979_v34 }
 0x11f   : > { %6945 = vmatprep.subr.mxu1 %v975_v46  ;;  %6966 = vmatprep.subr.mxu0 %v973_v38  ;;  %v982_v51 = vand.u32 4294901760, %v981_v48 }
 0x120   : > { %6946 = vmatpush3.msra.mxu1 %v975_v46  ;;  %6957 = vmatmul.mubr.f32.vlgmr.msra.gmra.mxu0 %v8165_v43 }
 0x121   : > { %6967 = vmatpush3.msra.mxu0 %v973_v38  ;;  %6947 = vmatprep.subr.mxu1 %v982_v51 }
 0x122   : > { %6968 = vmatprep.subr.mxu0 %v980_v42  ;;  %6948 = vmatpush3.msra.mxu1 %v982_v51 }
 0x123   : > { %6969 = vmatpush3.msra.mxu0 %v980_v42  ;;  %6950 = vmatmul.mubr.f32.vlgmr.msra.gmra.mxu1 %v8162_v32 }
 0x124   : > { %6959 = vmatprep.subr.mxu1 %v884_v12  ;;  %6970 = vmatprep.mubr.f32.mxu0 %v8145_v0 }
 0x125   : > { %6980 = vmatprep.subr.mxu0 %v7884_v3  ;;  %6960 = vmatpush3.msra.mxu1 %v884_v12 }
 0x126   : > { %6971 = vmatmul.mubr.f32.vlgmr.msra.gmra.mxu0 %v8162_v32  ;;  %6961 = vmatprep.subr.mxu1 %v887_v30 }
 0x127   : > { %6981 = vmatpush3.msra.mxu0 %v7884_v3  ;;  %6962 = vmatpush3.msra.mxu1 %v887_v30 }
 0x128   : > { %6982 = vmatprep.subr.mxu0 %v7886_v4  ;;  %6963 = vmatprep.mubr.f32.mxu1 %v8152_v2 }
 0x129   : > { %6983 = vmatpush3.msra.mxu0 %v7886_v4  ;;  %6964 = vmatmul.mubr.f32.vlgmr.msra.gmra.mxu1 %v8168_v54 }
 0x12a   : > { %6973 = vmatprep.subr.mxu1 %v884_v12  ;;  %6984 = vmatprep.subr.mxu0 %v7888_v5 }
 0x12b   : > { %6974 = vmatpush3.msra.mxu1 %v884_v12  ;;  %6985 = vmatpush3.msra.mxu0 %v7888_v5  ;;  %v1449_v12 = vsub.f32 %v8209_v62, %v1448_v6 }
 0x12c   : > { %6975 = vmatprep.subr.mxu1 %v887_v30  ;;  %6986 = vmatprep.subr.mxu0 %v7899_v9 }
 0x12d   : > { %6976 = vmatpush3.msra.mxu1 %v887_v30  ;;  %6977 = vmatprep.mubr.f32.mxu1 %v8145_v0  ;;  %v1450_v29 = vand.u32 4294901760, %v1449_v12 }
 0x12e   : > { %6987 = vmatpush3.msra.mxu0 %v7899_v9  ;;  %6978 = vmatmul.mubr.f32.vlgmr.msra.gmra.mxu1 %v8162_v32 }
 0x12f   : > { %6988 = vmatprep.subr.mxu0 %v7901_v10  ;;  %6999 = vmatprep.subr.mxu1 %v7988_v36 }
 0x130   : > { %6989 = vmatpush3.msra.mxu0 %v7901_v10  ;;  %7000 = vmatpush3.msra.mxu1 %v7988_v36 }
 0x131   : > { %6990 = vmatprep.subr.mxu0 %v7903_v11  ;;  %7001 = vmatprep.subr.mxu1 %v7990_v37 }
 0x132   : > { %6991 = vmatpush3.msra.mxu0 %v7903_v11  ;;  %7002 = vmatpush3.msra.mxu1 %v7990_v37 }
 0x133   : > { %6992 = vmatprep.subr.mxu0 %v7921_v16  ;;  %7003 = vmatprep.subr.mxu1 %v8004_v41 }
 0x134   : > { %6993 = vmatpush3.msra.mxu0 %v7921_v16  ;;  %7004 = vmatpush3.msra.mxu1 %v8004_v41 }
 0x135   : > { %6994 = vmatprep.subr.mxu0 %v7947_v24  ;;  %7005 = vmatprep.subr.mxu1 %v8020_v47 }
 0x136   : > { %6995 = vmatpush3.msra.mxu0 %v7947_v24  ;;  %7006 = vmatpush3.msra.mxu1 %v8020_v47 }
 0x137   : > { %6996 = vmatprep.mubr.f32.mxu0 %v1440_v13  ;;  %7007 = vmatprep.subr.mxu1 %v8037_v52 }
 0x138   : > { %7018 = vmatprep.subr.mxu0 %v7916_v14  ;;  %6997 = vmatmul.mubr.f32.vlgmr.msra.gmra.mxu0 %v1450_v29 }
 0x139   : > { %7008 = vmatpush3.msra.mxu1 %v8037_v52  ;;  %7019 = vmatpush3.msra.mxu0 %v7916_v14 }
 0x13a   : > { %7009 = vmatprep.subr.mxu1 %v8046_v56  ;;  %7020 = vmatprep.subr.mxu0 %v7919_v15 }
 0x13b   : > { %7010 = vmatpush3.msra.mxu1 %v8046_v56  ;;  %7021 = vmatpush3.msra.mxu0 %v7919_v15 }
 0x13c   : > { %7011 = vmatprep.subr.mxu1 %v8056_v59  ;;  %7022 = vmatprep.subr.mxu0 %v7924_v17 }
 0x13d   : > { %7012 = vmatpush3.msra.mxu1 %v8056_v59  ;;  %7023 = vmatpush3.msra.mxu0 %v7924_v17 }
 0x13e   : > { %7013 = vmatprep.subr.mxu1 %v8061_v61  ;;  %7024 = vmatprep.subr.mxu0 %v7928_v18 }
 0x13f   : > { %7014 = vmatpush3.msra.mxu1 %v8061_v61  ;;  %7015 = vmatprep.mubr.f32.mxu1 %v8195_v57 }
 0x140   : > { %7025 = vmatpush3.msra.mxu0 %v7928_v18  ;;  %7016 = vmatmul.mubr.f32.vlgmr.msra.gmra.mxu1 %v8198_v58 }
 0x141   : > { %7026 = vmatprep.subr.mxu0 %v7932_v19  ;;  %7037 = vmatprep.subr.mxu1 %v7884_v3 }
 0x142   : > { %7027 = vmatpush3.msra.mxu0 %v7932_v19  ;;  %7038 = vmatpush3.msra.mxu1 %v7884_v3 }
 0x143   : > { %7028 = vmatprep.subr.mxu0 %v7935_v20  ;;  %7039 = vmatprep.subr.mxu1 %v7886_v4 }
 0x144   : > { %7029 = vmatpush3.msra.mxu0 %v7935_v20  ;;  %7040 = vmatpush3.msra.mxu1 %v7886_v4 }
 0x145   : > { %7030 = vmatprep.subr.mxu0 %v7967_v28  ;;  %7041 = vmatprep.subr.mxu1 %v7888_v5 }
 0x146   : > { %7031 = vmatpush3.msra.mxu0 %v7967_v28  ;;  %7042 = vmatpush3.msra.mxu1 %v7888_v5 }
 0x147   : > { %7032 = vmatprep.subr.mxu0 %v7995_v39  ;;  %7043 = vmatprep.subr.mxu1 %v7899_v9 }
 0x148   : > { %7033 = vmatpush3.msra.mxu0 %v7995_v39  ;;  %7034 = vmatprep.mubr.f32.mxu0 %v8204_v60 }
 0x149   : > { %7044 = vmatpush3.msra.mxu1 %v7899_v9  ;;  %7035 = vmatmul.mubr.f32.vlgmr.msra.gmra.mxu0 %v8209_v62 }
 0x14a   : > { %7045 = vmatprep.subr.mxu1 %v7901_v10  ;;  %7056 = vmatprep.subr.mxu0 %v7939_v21 }
 0x14b   : > { %7046 = vmatpush3.msra.mxu1 %v7901_v10  ;;  %7057 = vmatpush3.msra.mxu0 %v7939_v21 }
 0x14c   : > { %7047 = vmatprep.subr.mxu1 %v7903_v11  ;;  %7058 = vmatprep.subr.mxu0 %v7942_v22 }
 0x14d   : > { %7048 = vmatpush3.msra.mxu1 %v7903_v11  ;;  %7059 = vmatpush3.msra.mxu0 %v7942_v22 }
 0x14e   : > { %7049 = vmatprep.subr.mxu1 %v7921_v16  ;;  %7060 = vmatprep.subr.mxu0 %v7945_v23 }
 0x14f   : > { %7050 = vmatpush3.msra.mxu1 %v7921_v16  ;;  %7061 = vmatpush3.msra.mxu0 %v7945_v23 }
 0x150   : > { %7051 = vmatprep.subr.mxu1 %v7947_v24  ;;  %7062 = vmatprep.subr.mxu0 %v7958_v25 }
 0x151   : > { %7052 = vmatpush3.msra.mxu1 %v7947_v24  ;;  %7053 = vmatprep.mubr.f32.mxu1 %v1438_v63 }
 0x152   : > { %7063 = vmatpush3.msra.mxu0 %v7958_v25  ;;  %7054 = vmatmul.mubr.f32.vlgmr.msra.gmra.mxu1 %v1448_v6 }
 0x153   : > { %7064 = vmatprep.subr.mxu0 %v7964_v27  ;;  %7075 = vmatprep.subr.mxu1 %v7884_v3 }
 0x154   : > { %7065 = vmatpush3.msra.mxu0 %v7964_v27  ;;  %7076 = vmatpush3.msra.mxu1 %v7884_v3 }
 0x155   : > { %7066 = vmatprep.subr.mxu0 %v7985_v35  ;;  %7077 = vmatprep.subr.mxu1 %v7886_v4 }
 0x156   : > { %7067 = vmatpush3.msra.mxu0 %v7985_v35  ;;  %7078 = vmatpush3.msra.mxu1 %v7886_v4 }
 0x157   : > { %7068 = vmatprep.subr.mxu0 %v8011_v44  ;;  %7079 = vmatprep.subr.mxu1 %v7888_v5 }
 0x158   : > { %7069 = vmatpush3.msra.mxu0 %v8011_v44  ;;  %7080 = vmatpush3.msra.mxu1 %v7888_v5 }
 0x159   : > { %7070 = vmatprep.subr.mxu0 %v8025_v49  ;;  %7081 = vmatprep.subr.mxu1 %v7899_v9 }
 0x15a   : > { %7071 = vmatpush3.msra.mxu0 %v8025_v49  ;;  %7072 = vmatprep.mubr.f32.mxu0 %v8195_v57 }
 0x15b   : > { %7082 = vmatpush3.msra.mxu1 %v7899_v9  ;;  %7073 = vmatmul.mubr.f32.vlgmr.msra.gmra.mxu0 %v8198_v58 }
 0x15c   : > { %7083 = vmatprep.subr.mxu1 %v7901_v10  ;;  %7091 = vmatprep.mubr.f32.mxu1 %v8195_v57 }
 0x15d   : > { %7084 = vmatpush3.msra.mxu1 %v7901_v10  ;;  %7098 = vmatprep.mubr.f32.mxu0 %v8156_v7 }
 0x15e   : > { %7085 = vmatprep.subr.mxu1 %v7903_v11 }
 0x15f   : > { %7086 = vmatpush3.msra.mxu1 %v7903_v11 }
 0x160   : > { %7087 = vmatprep.subr.mxu1 %v7921_v16 }
 0x161   : > { %7088 = vmatpush3.msra.mxu1 %v7921_v16 }
 0x162   : > { %7089 = vmatprep.subr.mxu1 %v7947_v24 }
 0x163   : > { %7090 = vmatpush3.msra.mxu1 %v7947_v24 }
 0x164   : > { %7092 = vmatmul.mubr.f32.vlgmr.msra.gmra.mxu1 %v8198_v58 }
 0x165   : > { %7105 = vmatprep.mubr.f32.mxu1 %v8145_v0 }
 0x1db   : > { %v6944_v30 = vpop.f32.mrf.mxu0 }
 0x1dd   : > { %v928_v34 = vpop.f32.mrf.mxu0 }
 0x1e0   : > { %v6958_v38 = vpop.f32.mrf.mxu0 }
 0x1e2   : > { %v1101_v42 = vpop.f32.mrf.mxu0 }
 0x1e3   : > { %v6951_v40 = vpop.f32.mrf.mxu1 }
 0x1e4   : > { %v1026_v46 = vadd.f32 %v6951_v40, %v6944_v30 }
 0x1e5   : > { %v1019_v48 = vpop.f32.mrf.mxu1 }
 0x1e6   : > { %v1109_v51 = vadd.f32 %v6958_v38, %v1026_v46  ;;  %v1020_v53 = vadd.f32 %v1019_v48, %v928_v34  ;;  %v6972_v55 = vpop.f32.mrf.mxu0 }
 0x1e8   : > { %v1102_v57 = vadd.f32 %v1101_v42, %v1020_v53  ;;  %v1268_v6 = vpop.f32.mrf.mxu0 }
 0x1e9   : > { %v6965_v60 = vpop.f32.mrf.mxu1 }
 0x1ea   : > { %v1192_v62 = vadd.f32 %v6965_v60, %v1109_v51 }
 0x1eb   : > { %v1183_v63 = vpop.f32.mrf.mxu1 }
 0x1ec   : > { %v1275_v8 = vadd.f32 %v6972_v55, %v1192_v62  ;;  %v1184_v12 = vadd.f32 %v1183_v63, %v1102_v57 }
 0x1ee   : > { %v1269_v58 = vadd.f32 %v1268_v6, %v1184_v12  ;;  %v6979_v13 = vpop.f32.mrf.mxu1 }
 0x1ef   : > { %v8329_v29 = vadd.f32 %v6979_v13, %v1275_v8 }
 0x1f0   : > { %v1347_v50 = vpop.f32.mrf.mxu1 }
 0x1f1   : > { %9034 = vst [vmem:[#allocation10_spill] sm:$0xff] %v8329_v29  ;;  %v8331_v45 = vadd.f32 %v1347_v50, %v1269_v58 }
 0x1f3   : > { %9035 = vst [vmem:[#allocation11_spill] sm:$0xff] %v8331_v45 }
 0x1f8   : > { %v6998_v7 = vpop.f32.mrf.mxu0 }
 0x1fa   : > { %v1442_v30 = vpop.f32.mrf.mxu0 }
 0x200   : > { %v7017_v40 = vpop.f32.mrf.mxu1 }
 0x201   : > { %v1570_v48 = vadd.f32 %v7017_v40, %v6998_v7 }
 0x202   : > { %v1563_v34 = vpop.f32.mrf.mxu1 }
 0x203   : > { %v1564_v53 = vadd.f32 %v1563_v34, %v1442_v30  ;;  %v2445_v34 = vmul.f32 %v7961_v26, %v7961_v26 }
 0x209   : > { %v7036_v38 = vpop.f32.mrf.mxu0 }
 0x20a   : > { %v1665_v60 = vadd.f32 %v7036_v38, %v1570_v48 }
 0x20b   : > { %v1657_v46 = vpop.f32.mrf.mxu0 }
 0x20c   : > { %v1658_v57 = vadd.f32 %v1657_v46, %v1564_v53  ;;  %v2446_v46 = vmul.f32 %v7980_v33, %v7980_v33 }
 0x20e   : > { %v2451_v26 = vsel %vm261_vm0, %v2446_v46, 0 }
 0x212   : > { %v7055_v42 = vpop.f32.mrf.mxu1 }
 0x213   : > { %v1754_v62 = vadd.f32 %v7055_v42, %v1665_v60 }
 0x214   : > { %v1745_v55 = vpop.f32.mrf.mxu1 }
 0x215   : > { %v1746_v6 = vadd.f32 %v1745_v55, %v1658_v57 }
 0x21b   : > { %v7074_v51 = vpop.f32.mrf.mxu0 }
 0x21c   : > { %v1855_v8 = vadd.f32 %v7074_v51, %v1754_v62  ;;  %v2448_v51 = vsel %vm261_vm0, %v2445_v34, 0 }
 0x21d   : > { %v1848_v63 = vpop.f32.mrf.mxu0  ;;  %v8343_v33 = vand.u32 4294901760, %v2448_v51 }
 0x21e   : > { %v1849_v50 = vadd.f32 %v1848_v63, %v1746_v6  ;;  %v9036_v6 = vld [vmem:[#allocation5_spill] sm:$0xff] }
 0x21f   : > { %v8352_v53 = vsub.f32 %v2448_v51, %v8343_v33 }
 0x221   : > { %v2528_v55 = vand.u32 4294901760, %v8352_v53 }
 0x224   : > { %v7093_v12 = vpop.f32.mrf.mxu1 }
 0x225   : > { %v1940_v58 = vadd.f32 %v7093_v12, %v1855_v8  ;;  %v9037_v8 = vld [vmem:[#allocation6_spill] sm:$0xff]  ;;  %v9038_v12 = vld [vmem:[#allocation7_spill] sm:$0xff] }
 0x226   : > { %v1933_v13 = vpop.f32.mrf.mxu1 }
 0x227   : > { %v1972_v45 = vand.u32 4294901760, %v1940_v58  ;;  %v1934_v29 = vadd.f32 %v1933_v13, %v1849_v50 }
 0x229   : > { %v2060_v49 = vsub.f32 %v1940_v58, %v1972_v45  ;;  %v1975_v44 = vand.u32 4294901760, %v1934_v29  ;;  %7094 = vmatprep.subr.mxu0 %v1972_v45 }
 0x22a   : > { %7095 = vmatpush3.msra.mxu0 %v1972_v45 }
 0x22b   : > { %v2067_v7 = vsub.f32 %v1934_v29, %v1975_v44  ;;  %7096 = vmatprep.subr.mxu0 %v1975_v44  ;;  %v2061_v30 = vand.u32 4294901760, %v2060_v49 }
 0x22c   : > { %7097 = vmatpush3.msra.mxu0 %v1975_v44 }
 0x22d   : > { %7108 = vmatprep.subr.mxu0 %v2060_v49  ;;  %7099 = vmatmul.mubr.f32.vlgmr.msra.gmra.mxu0 %v8172_v31  ;;  %v2062_v40 = vsub.f32 %v2060_v49, %v2061_v30  ;;  %v2068_v38 = vand.u32 4294901760, %v2067_v7 }
 0x22e   : > { %7109 = vmatpush3.msra.mxu0 %v2060_v49  ;;  %7112 = vmatprep.mubr.f32.mxu0 %v8148_v1  ;;  %v8346_v49 = vand.u32 4294901760, %v2451_v26 }
 0x22f   : > { %7110 = vmatprep.subr.mxu0 %v2067_v7  ;;  %v2063_v42 = vand.u32 4294901760, %v2062_v40  ;;  %v2069_v29 = vsub.f32 %v2067_v7, %v2068_v38 }
 0x230   : > { %7111 = vmatpush3.msra.mxu0 %v2067_v7  ;;  %v8357_v60 = vsub.f32 %v2451_v26, %v8346_v49 }
 0x231   : > { %7101 = vmatprep.subr.mxu1 %v2063_v42  ;;  %7122 = vmatprep.subr.mxu0 %v2061_v30  ;;  %v2070_v48 = vand.u32 4294901760, %v2069_v29 }
 0x232   : > { %7102 = vmatpush3.msra.mxu1 %v2063_v42  ;;  %7113 = vmatmul.mubr.f32.vlgmr.msra.gmra.mxu0 %v8165_v43  ;;  %v2538_v57 = vand.u32 4294901760, %v8357_v60 }
 0x233   : > { %7123 = vmatpush3.msra.mxu0 %v2061_v30  ;;  %7103 = vmatprep.subr.mxu1 %v2070_v48 }
 0x234   : > { %7124 = vmatprep.subr.mxu0 %v2068_v38  ;;  %7104 = vmatpush3.msra.mxu1 %v2070_v48 }
 0x235   : > { %7125 = vmatpush3.msra.mxu0 %v2068_v38  ;;  %7106 = vmatmul.mubr.f32.vlgmr.msra.gmra.mxu1 %v8162_v32 }
 0x236   : > { %7115 = vmatprep.subr.mxu1 %v1972_v45  ;;  %7126 = vmatprep.mubr.f32.mxu0 %v8145_v0 }
 0x237   : > { %7136 = vmatprep.subr.mxu0 %v7884_v3  ;;  %7116 = vmatpush3.msra.mxu1 %v1972_v45 }
 0x238   : > { %7127 = vmatmul.mubr.f32.vlgmr.msra.gmra.mxu0 %v8162_v32  ;;  %7117 = vmatprep.subr.mxu1 %v1975_v44 }
 0x239   : > { %7137 = vmatpush3.msra.mxu0 %v7884_v3  ;;  %7118 = vmatpush3.msra.mxu1 %v1975_v44 }
 0x23a   : > { %7138 = vmatprep.subr.mxu0 %v7886_v4  ;;  %7119 = vmatprep.mubr.f32.mxu1 %v8152_v2 }
 0x23b   : > { %7139 = vmatpush3.msra.mxu0 %v7886_v4  ;;  %7120 = vmatmul.mubr.f32.vlgmr.msra.gmra.mxu1 %v8168_v54 }
 0x23c   : > { %7129 = vmatprep.subr.mxu1 %v1972_v45  ;;  %7140 = vmatprep.subr.mxu0 %v7888_v5 }
 0x23d   : > { %7130 = vmatpush3.msra.mxu1 %v1972_v45  ;;  %7141 = vmatpush3.msra.mxu0 %v7888_v5  ;;  %v2529_v45 = vsub.f32 %v8352_v53, %v2528_v55 }
 0x23e   : > { %7131 = vmatprep.subr.mxu1 %v1975_v44  ;;  %7142 = vmatprep.subr.mxu0 %v7899_v9 }
 0x23f   : > { %7132 = vmatpush3.msra.mxu1 %v1975_v44  ;;  %7133 = vmatprep.mubr.f32.mxu1 %v8145_v0  ;;  %v2539_v44 = vsub.f32 %v8357_v60, %v2538_v57  ;;  %v2530_v62 = vand.u32 4294901760, %v2529_v45 }
 0x240   : > { %7143 = vmatpush3.msra.mxu0 %v7899_v9  ;;  %7134 = vmatmul.mubr.f32.vlgmr.msra.gmra.mxu1 %v8162_v32 }
 0x241   : > { %7144 = vmatprep.subr.mxu0 %v7901_v10  ;;  %7155 = vmatprep.subr.mxu1 %v7988_v36  ;;  %v2540_v63 = vand.u32 4294901760, %v2539_v44 }
 0x242   : > { %7145 = vmatpush3.msra.mxu0 %v7901_v10  ;;  %7156 = vmatpush3.msra.mxu1 %v7988_v36 }
 0x243   : > { %7146 = vmatprep.subr.mxu0 %v7903_v11  ;;  %7157 = vmatprep.subr.mxu1 %v7990_v37 }
 0x244   : > { %7147 = vmatpush3.msra.mxu0 %v7903_v11  ;;  %7158 = vmatpush3.msra.mxu1 %v7990_v37 }
 0x245   : > { %7148 = vmatprep.subr.mxu0 %v7921_v16  ;;  %7159 = vmatprep.subr.mxu1 %v8004_v41 }
 0x246   : > { %7149 = vmatpush3.msra.mxu0 %v7921_v16  ;;  %7160 = vmatpush3.msra.mxu1 %v8004_v41 }
 0x247   : > { %7150 = vmatprep.subr.mxu0 %v7947_v24  ;;  %7161 = vmatprep.subr.mxu1 %v8020_v47 }
 0x248   : > { %7151 = vmatpush3.msra.mxu0 %v7947_v24  ;;  %7162 = vmatpush3.msra.mxu1 %v8020_v47 }
 0x249   : > { %7152 = vmatprep.mubr.f32.mxu0 %v2530_v62  ;;  %7163 = vmatprep.subr.mxu1 %v8037_v52  ;;  %v9040_v62 = vld [vmem:[#allocation11_spill] sm:$0xff] }
 0x24a   : > { %7174 = vmatprep.subr.mxu0 %v7916_v14  ;;  %7153 = vmatmul.mubr.f32.vlgmr.msra.gmra.mxu0 %v2540_v63  ;;  %v5727_v63 = vmul.f32 2.0, %v9040_v62 }
 0x24b   : > { %7164 = vmatpush3.msra.mxu1 %v8037_v52  ;;  %7175 = vmatpush3.msra.mxu0 %v7916_v14 }
 0x24c   : > { %7165 = vmatprep.subr.mxu1 %v8046_v56  ;;  %7176 = vmatprep.subr.mxu0 %v7919_v15 }
 0x24d   : > { %7166 = vmatpush3.msra.mxu1 %v8046_v56  ;;  %7177 = vmatpush3.msra.mxu0 %v7919_v15 }
 0x24e   : > { %7167 = vmatprep.subr.mxu1 %v8056_v59  ;;  %7178 = vmatprep.subr.mxu0 %v7924_v17 }
 0x24f   : > { %7168 = vmatpush3.msra.mxu1 %v8056_v59  ;;  %7179 = vmatpush3.msra.mxu0 %v7924_v17 }
 0x250   : > { %7169 = vmatprep.subr.mxu1 %v8061_v61  ;;  %7180 = vmatprep.subr.mxu0 %v7928_v18 }
 0x251   : > { %7170 = vmatpush3.msra.mxu1 %v8061_v61  ;;  %7171 = vmatprep.mubr.f32.mxu1 %v8343_v33 }
 0x252   : > { %7181 = vmatpush3.msra.mxu0 %v7928_v18  ;;  %7172 = vmatmul.mubr.f32.vlgmr.msra.gmra.mxu1 %v8346_v49 }
 0x253   : > { %7182 = vmatprep.subr.mxu0 %v7932_v19  ;;  %7193 = vmatprep.subr.mxu1 %v7884_v3 }
 0x254   : > { %7183 = vmatpush3.msra.mxu0 %v7932_v19  ;;  %7194 = vmatpush3.msra.mxu1 %v7884_v3 }
 0x255   : > { %7184 = vmatprep.subr.mxu0 %v7935_v20  ;;  %7195 = vmatprep.subr.mxu1 %v7886_v4 }
 0x256   : > { %7185 = vmatpush3.msra.mxu0 %v7935_v20  ;;  %7196 = vmatpush3.msra.mxu1 %v7886_v4 }
 0x257   : > { %7186 = vmatprep.subr.mxu0 %v7967_v28  ;;  %7197 = vmatprep.subr.mxu1 %v7888_v5 }
 0x258   : > { %7187 = vmatpush3.msra.mxu0 %v7967_v28  ;;  %7198 = vmatpush3.msra.mxu1 %v7888_v5 }
 0x259   : > { %7188 = vmatprep.subr.mxu0 %v7995_v39  ;;  %7199 = vmatprep.subr.mxu1 %v7899_v9 }
 0x25a   : > { %7189 = vmatpush3.msra.mxu0 %v7995_v39  ;;  %7190 = vmatprep.mubr.f32.mxu0 %v8352_v53 }
 0x25b   : > { %7200 = vmatpush3.msra.mxu1 %v7899_v9  ;;  %7191 = vmatmul.mubr.f32.vlgmr.msra.gmra.mxu0 %v8357_v60 }
 0x25c   : > { %7201 = vmatprep.subr.mxu1 %v7901_v10  ;;  %7212 = vmatprep.subr.mxu0 %v7939_v21 }
 0x25d   : > { %7202 = vmatpush3.msra.mxu1 %v7901_v10  ;;  %7213 = vmatpush3.msra.mxu0 %v7939_v21 }
 0x25e   : > { %7203 = vmatprep.subr.mxu1 %v7903_v11  ;;  %7214 = vmatprep.subr.mxu0 %v7942_v22 }
 0x25f   : > { %7204 = vmatpush3.msra.mxu1 %v7903_v11  ;;  %7215 = vmatpush3.msra.mxu0 %v7942_v22 }
 0x260   : > { %7205 = vmatprep.subr.mxu1 %v7921_v16  ;;  %7216 = vmatprep.subr.mxu0 %v7945_v23 }
 0x261   : > { %7206 = vmatpush3.msra.mxu1 %v7921_v16  ;;  %7217 = vmatpush3.msra.mxu0 %v7945_v23 }
 0x262   : > { %7207 = vmatprep.subr.mxu1 %v7947_v24  ;;  %7218 = vmatprep.subr.mxu0 %v7958_v25 }
 0x263   : > { %7208 = vmatpush3.msra.mxu1 %v7947_v24  ;;  %7209 = vmatprep.mubr.f32.mxu1 %v2528_v55 }
 0x264   : > { %7219 = vmatpush3.msra.mxu0 %v7958_v25  ;;  %7210 = vmatmul.mubr.f32.vlgmr.msra.gmra.mxu1 %v2538_v57  ;;  %v9039_v57 = vld [vmem:[#allocation10_spill] sm:$0xff] }
 0x265   : > { %7220 = vmatprep.subr.mxu0 %v7964_v27  ;;  %7231 = vmatprep.subr.mxu1 %v7884_v3  ;;  %v5728_v45 = vmul.f32 2.0, %v9039_v57 }
 0x266   : > { %7221 = vmatpush3.msra.mxu0 %v7964_v27  ;;  %7232 = vmatpush3.msra.mxu1 %v7884_v3 }
 0x267   : > { %7222 = vmatprep.subr.mxu0 %v7985_v35  ;;  %7233 = vmatprep.subr.mxu1 %v7886_v4 }
 0x268   : > { %7223 = vmatpush3.msra.mxu0 %v7985_v35  ;;  %7234 = vmatpush3.msra.mxu1 %v7886_v4 }
 0x269   : > { %7224 = vmatprep.subr.mxu0 %v9036_v6  ;;  %7235 = vmatprep.subr.mxu1 %v7888_v5 }
 0x26a   : > { %7225 = vmatpush3.msra.mxu0 %v9036_v6  ;;  %7236 = vmatpush3.msra.mxu1 %v7888_v5 }
 0x26b   : > { %7226 = vmatprep.subr.mxu0 %v9037_v8  ;;  %7237 = vmatprep.subr.mxu1 %v7899_v9 }
 0x26c   : > { %7227 = vmatpush3.msra.mxu0 %v9037_v8  ;;  %7228 = vmatprep.mubr.f32.mxu0 %v8343_v33 }
 0x26d   : > { %7238 = vmatpush3.msra.mxu1 %v7899_v9  ;;  %7229 = vmatmul.mubr.f32.vlgmr.msra.gmra.mxu0 %v8346_v49 }
 0x26e   : > { %7239 = vmatprep.subr.mxu1 %v7901_v10  ;;  %7247 = vmatprep.mubr.f32.mxu1 %v8343_v33 }
 0x26f   : > { %7240 = vmatpush3.msra.mxu1 %v7901_v10  ;;  %7254 = vmatprep.mubr.f32.mxu0 %v9038_v12 }
 0x270   : > { %7241 = vmatprep.subr.mxu1 %v7903_v11 }
 0x271   : > { %7242 = vmatpush3.msra.mxu1 %v7903_v11 }
 0x272   : > { %7243 = vmatprep.subr.mxu1 %v7921_v16 }
 0x273   : > { %7244 = vmatpush3.msra.mxu1 %v7921_v16 }
 0x274   : > { %7245 = vmatprep.subr.mxu1 %v7947_v24 }
 0x275   : > { %7246 = vmatpush3.msra.mxu1 %v7947_v24 }
 0x276   : > { %7248 = vmatmul.mubr.f32.vlgmr.msra.gmra.mxu1 %v8346_v49 }
 0x277   : > { %7261 = vmatprep.mubr.f32.mxu1 %v8145_v0 }
 0x2ed   : > { %v7100_v50 = vpop.f32.mrf.mxu0 }
 0x2ef   : > { %v2016_v58 = vpop.f32.mrf.mxu0 }
 0x2f2   : > { %v7114_v13 = vpop.f32.mrf.mxu0 }
 0x2f4   : > { %v2189_v30 = vpop.f32.mrf.mxu0 }
 0x2f5   : > { %v7107_v7 = vpop.f32.mrf.mxu1 }
 0x2f6   : > { %v2114_v40 = vadd.f32 %v7107_v7, %v7100_v50  ;;  %v8481_v50 = vmul.f32 %v9039_v57, %v9039_v57 }
 0x2f7   : > { %v2107_v38 = vpop.f32.mrf.mxu1 }
 0x2f8   : > { %v2197_v34 = vadd.f32 %v7114_v13, %v2114_v40  ;;  %v2108_v46 = vadd.f32 %v2107_v38, %v2016_v58  ;;  %v7128_v42 = vpop.f32.mrf.mxu0  ;;  %9041 = vst [vmem:[#allocation5_spill] sm:$0xff] %v8481_v50  ;;  %v8494_v38 = vmul.f32 %v9040_v62, %v9040_v62 }
 0x2fa   : > { %v2190_v29 = vadd.f32 %v2189_v30, %v2108_v46  ;;  %v2356_v33 = vpop.f32.mrf.mxu0  ;;  %9046 = vst [vmem:[#allocation13_spill] sm:$0xff] %v8494_v38 }
 0x2fb   : > { %v7121_v48 = vpop.f32.mrf.mxu1 }
 0x2fc   : > { %v2280_v51 = vadd.f32 %v7121_v48, %v2197_v34 }
 0x2fd   : > { %v2271_v26 = vpop.f32.mrf.mxu1 }
 0x2fe   : > { %v2363_v53 = vadd.f32 %v7128_v42, %v2280_v51  ;;  %v2272_v60 = vadd.f32 %v2271_v26, %v2190_v29 }
 0x300   : > { %v2357_v49 = vadd.f32 %v2356_v33, %v2272_v60  ;;  %v7135_v55 = vpop.f32.mrf.mxu1 }
 0x301   : > { %v2442_v44 = vadd.f32 %v7135_v55, %v2363_v53 }
 0x302   : > { %v2435_v12 = vpop.f32.mrf.mxu1 }
 0x303   : > { %v8483_v58 = vmul.f32 %v5728_v45, %v2442_v44  ;;  %v2436_v13 = vadd.f32 %v2435_v12, %v2357_v49  ;;  %v8485_v7 = vmul.f32 %v2442_v44, %v2442_v44  ;;  %v8488_v30 = vmul.f32 %v2442_v44, %v9039_v57 }
 0x305   : > { %9042 = vst [vmem:[#allocation6_spill] sm:$0xff] %v8483_v58  ;;  %9043 = vst [vmem:[#allocation10_spill] sm:$0xff] %v8485_v7  ;;  %v8490_v40 = vmul.f32 %v5727_v63, %v2436_v13  ;;  %v8498_v34 = vadd.f32 %v8485_v7, %v8481_v50  ;;  %v8500_v46 = vmul.f32 %v2436_v13, %v2436_v13 }
 0x306   : > { %9044 = vst [vmem:[#allocation11_spill] sm:$0xff] %v8488_v30  ;;  %v8503_v42 = vmul.f32 %v2436_v13, %v9040_v62 }
 0x307   : > { %9045 = vst [vmem:[#allocation12_spill] sm:$0xff] %v8490_v40  ;;  %9047 = vst [vmem:[#allocation14_spill] sm:$0xff] %v8498_v34  ;;  %v8507_v12 = vadd.f32 %v8500_v46, %v8494_v38 }
 0x308   : > { %9048 = vst [vmem:[#allocation15_spill] sm:$0xff] %v8500_v46  ;;  %9049 = vst [vmem:[#allocation16_spill] sm:$0xff] %v8503_v42 }
 0x309   : > { %9050 = vst [vmem:[#allocation17_spill] sm:$0xff] %v8507_v12 }
 0x30a   : > { %v7154_v29 = vpop.f32.mrf.mxu0 }
 0x30c   : > { %v2532_v48 = vpop.f32.mrf.mxu0 }
 0x312   : > { %v7173_v51 = vpop.f32.mrf.mxu1 }
 0x313   : > { %v2660_v49 = vadd.f32 %v7173_v51, %v7154_v29 }
 0x314   : > { %v2653_v33 = vpop.f32.mrf.mxu1 }
 0x315   : > { %v2654_v57 = vadd.f32 %v2653_v33, %v2532_v48 }
 0x31b   : > { %v7192_v26 = vpop.f32.mrf.mxu0 }
 0x31c   : > { %v2755_v45 = vadd.f32 %v7192_v26, %v2660_v49 }
 0x31d   : > { %v2747_v53 = vpop.f32.mrf.mxu0 }
 0x31e   : > { %v2748_v63 = vadd.f32 %v2747_v53, %v2654_v57 }
 0x324   : > { %v7211_v60 = vpop.f32.mrf.mxu1 }
 0x325   : > { %v2844_v40 = vadd.f32 %v7211_v60, %v2755_v45 }
 0x326   : > { %v2835_v44 = vpop.f32.mrf.mxu1 }
 0x327   : > { %v2836_v13 = vadd.f32 %v2835_v44, %v2748_v63 }
 0x32d   : > { %v7230_v55 = vpop.f32.mrf.mxu0 }
 0x32e   : > { %v2945_v58 = vadd.f32 %v7230_v55, %v2844_v40 }
 0x32f   : > { %v2938_v62 = vpop.f32.mrf.mxu0 }
 0x330   : > { %v2939_v30 = vadd.f32 %v2938_v62, %v2836_v13  ;;  %v9053_v62 = vld [vmem:[#allocation7_spill] sm:$0xff] }
 0x336   : > { %v7249_v42 = vpop.f32.mrf.mxu1 }
 0x337   : > { %v3030_v12 = vadd.f32 %v7249_v42, %v2945_v58  ;;  %v9051_v58 = vld [vmem:[#allocation8_spill] sm:$0xff] }
 0x338   : > { %v3023_v34 = vpop.f32.mrf.mxu1  ;;  %v3539_v40 = vmul.f32 %v9051_v58, %v9051_v58 }
 0x339   : > { %v3062_v46 = vand.u32 4294901760, %v3030_v12  ;;  %v3024_v7 = vadd.f32 %v3023_v34, %v2939_v30  ;;  %v9052_v30 = vld [vmem:[#allocation9_spill] sm:$0xff] }
 0x33a   : > { %v3540_v34 = vmul.f32 %v9052_v30, %v9052_v30 }
 0x33b   : > { %v3150_v38 = vsub.f32 %v3030_v12, %v3062_v46  ;;  %v3065_v50 = vand.u32 4294901760, %v3024_v7  ;;  %7250 = vmatprep.subr.mxu0 %v3062_v46 }
 0x33c   : > { %7251 = vmatpush3.msra.mxu0 %v3062_v46  ;;  %v3545_v33 = vsel %vm261_vm0, %v3540_v34, 0 }
 0x33d   : > { %v3157_v29 = vsub.f32 %v3024_v7, %v3065_v50  ;;  %7252 = vmatprep.subr.mxu0 %v3065_v50  ;;  %v3151_v48 = vand.u32 4294901760, %v3150_v38  ;;  %v8522_v60 = vand.u32 4294901760, %v3545_v33 }
 0x33e   : > { %7253 = vmatpush3.msra.mxu0 %v3065_v50 }
 0x33f   : > { %7264 = vmatprep.subr.mxu0 %v3150_v38  ;;  %7255 = vmatmul.mubr.f32.vlgmr.msra.gmra.mxu0 %v8172_v31  ;;  %v3152_v51 = vsub.f32 %v3150_v38, %v3151_v48  ;;  %v3158_v26 = vand.u32 4294901760, %v3157_v29  ;;  %v8533_v55 = vsub.f32 %v3545_v33, %v8522_v60 }
 0x340   : > { %7265 = vmatpush3.msra.mxu0 %v3150_v38  ;;  %7268 = vmatprep.mubr.f32.mxu0 %v8148_v1  ;;  %v3542_v38 = vsel %vm261_vm0, %v3539_v40, 0 }
 0x341   : > { %7266 = vmatprep.subr.mxu0 %v3157_v29  ;;  %v3153_v42 = vand.u32 4294901760, %v3152_v51  ;;  %v3159_v7 = vsub.f32 %v3157_v29, %v3158_v26  ;;  %v8519_v53 = vand.u32 4294901760, %v3542_v38  ;;  %v3632_v45 = vand.u32 4294901760, %v8533_v55 }
 0x342   : > { %7267 = vmatpush3.msra.mxu0 %v3157_v29 }
 0x343   : > { %7257 = vmatprep.subr.mxu1 %v3153_v42  ;;  %7278 = vmatprep.subr.mxu0 %v3151_v48  ;;  %v3160_v12 = vand.u32 4294901760, %v3159_v7  ;;  %v8528_v49 = vsub.f32 %v3542_v38, %v8519_v53 }
 0x344   : > { %7258 = vmatpush3.msra.mxu1 %v3153_v42  ;;  %7269 = vmatmul.mubr.f32.vlgmr.msra.gmra.mxu0 %v8165_v43 }
 0x345   : > { %7279 = vmatpush3.msra.mxu0 %v3151_v48  ;;  %7259 = vmatprep.subr.mxu1 %v3160_v12  ;;  %v3622_v57 = vand.u32 4294901760, %v8528_v49 }
 0x346   : > { %7280 = vmatprep.subr.mxu0 %v3158_v26  ;;  %7260 = vmatpush3.msra.mxu1 %v3160_v12 }
 0x347   : > { %7281 = vmatpush3.msra.mxu0 %v3158_v26  ;;  %7262 = vmatmul.mubr.f32.vlgmr.msra.gmra.mxu1 %v8162_v32 }
 0x348   : > { %7271 = vmatprep.subr.mxu1 %v3062_v46  ;;  %7282 = vmatprep.mubr.f32.mxu0 %v8145_v0 }
 0x349   : > { %7292 = vmatprep.subr.mxu0 %v7884_v3  ;;  %7272 = vmatpush3.msra.mxu1 %v3062_v46 }
 0x34a   : > { %7283 = vmatmul.mubr.f32.vlgmr.msra.gmra.mxu0 %v8162_v32  ;;  %7273 = vmatprep.subr.mxu1 %v3065_v50 }
 0x34b   : > { %7293 = vmatpush3.msra.mxu0 %v7884_v3  ;;  %7274 = vmatpush3.msra.mxu1 %v3065_v50 }
 0x34c   : > { %7294 = vmatprep.subr.mxu0 %v7886_v4  ;;  %7275 = vmatprep.mubr.f32.mxu1 %v8152_v2 }
 0x34d   : > { %7295 = vmatpush3.msra.mxu0 %v7886_v4  ;;  %7276 = vmatmul.mubr.f32.vlgmr.msra.gmra.mxu1 %v8168_v54 }
 0x34e   : > { %7285 = vmatprep.subr.mxu1 %v3062_v46  ;;  %7296 = vmatprep.subr.mxu0 %v7888_v5 }
 0x34f   : > { %7286 = vmatpush3.msra.mxu1 %v3062_v46  ;;  %7297 = vmatpush3.msra.mxu0 %v7888_v5  ;;  %v3623_v46 = vsub.f32 %v8528_v49, %v3622_v57 }
 0x350   : > { %7287 = vmatprep.subr.mxu1 %v3065_v50  ;;  %7298 = vmatprep.subr.mxu0 %v7899_v9 }
 0x351   : > { %7288 = vmatpush3.msra.mxu1 %v3065_v50  ;;  %7289 = vmatprep.mubr.f32.mxu1 %v8145_v0  ;;  %v3633_v50 = vsub.f32 %v8533_v55, %v3632_v45  ;;  %v3624_v44 = vand.u32 4294901760, %v3623_v46 }
 0x352   : > { %7299 = vmatpush3.msra.mxu0 %v7899_v9  ;;  %7290 = vmatmul.mubr.f32.vlgmr.msra.gmra.mxu1 %v8162_v32 }
 0x353   : > { %7300 = vmatprep.subr.mxu0 %v7901_v10  ;;  %7311 = vmatprep.subr.mxu1 %v7988_v36  ;;  %v3634_v63 = vand.u32 4294901760, %v3633_v50 }
 0x354   : > { %7301 = vmatpush3.msra.mxu0 %v7901_v10  ;;  %7312 = vmatpush3.msra.mxu1 %v7988_v36 }
 0x355   : > { %7302 = vmatprep.subr.mxu0 %v7903_v11  ;;  %7313 = vmatprep.subr.mxu1 %v7990_v37 }
 0x356   : > { %7303 = vmatpush3.msra.mxu0 %v7903_v11  ;;  %7314 = vmatpush3.msra.mxu1 %v7990_v37 }
 0x357   : > { %7304 = vmatprep.subr.mxu0 %v7921_v16  ;;  %7315 = vmatprep.subr.mxu1 %v8004_v41 }
 0x358   : > { %7305 = vmatpush3.msra.mxu0 %v7921_v16  ;;  %7316 = vmatpush3.msra.mxu1 %v8004_v41 }
 0x359   : > { %7306 = vmatprep.subr.mxu0 %v7947_v24  ;;  %7317 = vmatprep.subr.mxu1 %v8020_v47 }
 0x35a   : > { %7307 = vmatpush3.msra.mxu0 %v7947_v24  ;;  %7318 = vmatpush3.msra.mxu1 %v8020_v47 }
 0x35b   : > { %7308 = vmatprep.mubr.f32.mxu0 %v3624_v44  ;;  %7319 = vmatprep.subr.mxu1 %v8037_v52 }
 0x35c   : > { %7330 = vmatprep.subr.mxu0 %v7916_v14  ;;  %7309 = vmatmul.mubr.f32.vlgmr.msra.gmra.mxu0 %v3634_v63 }
 0x35d   : > { %7320 = vmatpush3.msra.mxu1 %v8037_v52  ;;  %7331 = vmatpush3.msra.mxu0 %v7916_v14 }
 0x35e   : > { %7321 = vmatprep.subr.mxu1 %v8046_v56  ;;  %7332 = vmatprep.subr.mxu0 %v7919_v15 }
 0x35f   : > { %7322 = vmatpush3.msra.mxu1 %v8046_v56  ;;  %7333 = vmatpush3.msra.mxu0 %v7919_v15 }
 0x360   : > { %7323 = vmatprep.subr.mxu1 %v8056_v59  ;;  %7334 = vmatprep.subr.mxu0 %v7924_v17 }
 0x361   : > { %7324 = vmatpush3.msra.mxu1 %v8056_v59  ;;  %7335 = vmatpush3.msra.mxu0 %v7924_v17 }
 0x362   : > { %7325 = vmatprep.subr.mxu1 %v8061_v61  ;;  %7336 = vmatprep.subr.mxu0 %v7928_v18 }
 0x363   : > { %7326 = vmatpush3.msra.mxu1 %v8061_v61  ;;  %7327 = vmatprep.mubr.f32.mxu1 %v8519_v53 }
 0x364   : > { %7337 = vmatpush3.msra.mxu0 %v7928_v18  ;;  %7328 = vmatmul.mubr.f32.vlgmr.msra.gmra.mxu1 %v8522_v60 }
 0x365   : > { %7338 = vmatprep.subr.mxu0 %v7932_v19  ;;  %7349 = vmatprep.subr.mxu1 %v7884_v3 }
 0x366   : > { %7339 = vmatpush3.msra.mxu0 %v7932_v19  ;;  %7350 = vmatpush3.msra.mxu1 %v7884_v3 }
 0x367   : > { %7340 = vmatprep.subr.mxu0 %v7935_v20  ;;  %7351 = vmatprep.subr.mxu1 %v7886_v4 }
 0x368   : > { %7341 = vmatpush3.msra.mxu0 %v7935_v20  ;;  %7352 = vmatpush3.msra.mxu1 %v7886_v4 }
 0x369   : > { %7342 = vmatprep.subr.mxu0 %v7967_v28  ;;  %7353 = vmatprep.subr.mxu1 %v7888_v5 }
 0x36a   : > { %7343 = vmatpush3.msra.mxu0 %v7967_v28  ;;  %7354 = vmatpush3.msra.mxu1 %v7888_v5 }
 0x36b   : > { %7344 = vmatprep.subr.mxu0 %v7995_v39  ;;  %7355 = vmatprep.subr.mxu1 %v7899_v9 }
 0x36c   : > { %7345 = vmatpush3.msra.mxu0 %v7995_v39  ;;  %7346 = vmatprep.mubr.f32.mxu0 %v8528_v49 }
 0x36d   : > { %7356 = vmatpush3.msra.mxu1 %v7899_v9  ;;  %7347 = vmatmul.mubr.f32.vlgmr.msra.gmra.mxu0 %v8533_v55 }
 0x36e   : > { %7357 = vmatprep.subr.mxu1 %v7901_v10  ;;  %7368 = vmatprep.subr.mxu0 %v7939_v21 }
 0x36f   : > { %7358 = vmatpush3.msra.mxu1 %v7901_v10  ;;  %7369 = vmatpush3.msra.mxu0 %v7939_v21 }
 0x370   : > { %7359 = vmatprep.subr.mxu1 %v7903_v11  ;;  %7370 = vmatprep.subr.mxu0 %v7942_v22 }
 0x371   : > { %7360 = vmatpush3.msra.mxu1 %v7903_v11  ;;  %7371 = vmatpush3.msra.mxu0 %v7942_v22 }
 0x372   : > { %7361 = vmatprep.subr.mxu1 %v7921_v16  ;;  %7372 = vmatprep.subr.mxu0 %v7945_v23 }
 0x373   : > { %7362 = vmatpush3.msra.mxu1 %v7921_v16  ;;  %7373 = vmatpush3.msra.mxu0 %v7945_v23 }
 0x374   : > { %7363 = vmatprep.subr.mxu1 %v7947_v24  ;;  %7374 = vmatprep.subr.mxu0 %v7958_v25 }
 0x375   : > { %7364 = vmatpush3.msra.mxu1 %v7947_v24  ;;  %7365 = vmatprep.mubr.f32.mxu1 %v3622_v57 }
 0x376   : > { %7375 = vmatpush3.msra.mxu0 %v7958_v25  ;;  %7366 = vmatmul.mubr.f32.vlgmr.msra.gmra.mxu1 %v3632_v45 }
 0x377   : > { %7376 = vmatprep.subr.mxu0 %v7964_v27  ;;  %7387 = vmatprep.subr.mxu1 %v7884_v3 }
 0x378   : > { %7377 = vmatpush3.msra.mxu0 %v7964_v27  ;;  %7388 = vmatpush3.msra.mxu1 %v7884_v3 }
 0x379   : > { %7378 = vmatprep.subr.mxu0 %v7985_v35  ;;  %7389 = vmatprep.subr.mxu1 %v7886_v4 }
 0x37a   : > { %7379 = vmatpush3.msra.mxu0 %v7985_v35  ;;  %7390 = vmatpush3.msra.mxu1 %v7886_v4 }
 0x37b   : > { %7380 = vmatprep.subr.mxu0 %v9036_v6  ;;  %7391 = vmatprep.subr.mxu1 %v7888_v5 }
 0x37c   : > { %7381 = vmatpush3.msra.mxu0 %v9036_v6  ;;  %7392 = vmatpush3.msra.mxu1 %v7888_v5 }
 0x37d   : > { %7382 = vmatprep.subr.mxu0 %v9037_v8  ;;  %7393 = vmatprep.subr.mxu1 %v7899_v9 }
 0x37e   : > { %7383 = vmatpush3.msra.mxu0 %v9037_v8  ;;  %7384 = vmatprep.mubr.f32.mxu0 %v8519_v53 }
 0x37f   : > { %7394 = vmatpush3.msra.mxu1 %v7899_v9  ;;  %7385 = vmatmul.mubr.f32.vlgmr.msra.gmra.mxu0 %v8522_v60 }
 0x380   : > { %7395 = vmatprep.subr.mxu1 %v7901_v10  ;;  %7403 = vmatprep.mubr.f32.mxu1 %v8519_v53 }
 0x381   : > { %7396 = vmatpush3.msra.mxu1 %v7901_v10  ;;  %7410 = vmatprep.mubr.f32.mxu0 %v9053_v62 }
 0x382   : > { %7397 = vmatprep.subr.mxu1 %v7903_v11 }
 0x383   : > { %7398 = vmatpush3.msra.mxu1 %v7903_v11 }
 0x384   : > { %7399 = vmatprep.subr.mxu1 %v7921_v16 }
 0x385   : > { %7400 = vmatpush3.msra.mxu1 %v7921_v16 }
 0x386   : > { %7401 = vmatprep.subr.mxu1 %v7947_v24 }
 0x387   : > { %7402 = vmatpush3.msra.mxu1 %v7947_v24 }
 0x388   : > { %7404 = vmatmul.mubr.f32.vlgmr.msra.gmra.mxu1 %v8522_v60 }
 0x389   : > { %7417 = vmatprep.mubr.f32.mxu1 %v8145_v0 }
 0x3ff   : > { %v7256_v13 = vpop.f32.mrf.mxu0 }
 0x401   : > { %v3106_v29 = vpop.f32.mrf.mxu0 }
 0x404   : > { %v7270_v48 = vpop.f32.mrf.mxu0 }
 0x406   : > { %v3279_v26 = vpop.f32.mrf.mxu0 }
 0x407   : > { %v7263_v51 = vpop.f32.mrf.mxu1 }
 0x408   : > { %v3204_v58 = vadd.f32 %v7263_v51, %v7256_v13 }
 0x409   : > { %v3197_v40 = vpop.f32.mrf.mxu1 }
 0x40a   : > { %v3287_v30 = vadd.f32 %v7270_v48, %v3204_v58  ;;  %v3198_v34 = vadd.f32 %v3197_v40, %v3106_v29  ;;  %v7284_v42 = vpop.f32.mrf.mxu0 }
 0x40c   : > { %v3280_v7 = vadd.f32 %v3279_v26, %v3198_v34  ;;  %v3446_v53 = vpop.f32.mrf.mxu0 }
 0x40d   : > { %v7277_v12 = vpop.f32.mrf.mxu1 }
 0x40e   : > { %v3370_v38 = vadd.f32 %v7277_v12, %v3287_v30 }
 0x40f   : > { %v3361_v33 = vpop.f32.mrf.mxu1 }
 0x410   : > { %v3453_v49 = vadd.f32 %v7284_v42, %v3370_v38  ;;  %v3362_v55 = vadd.f32 %v3361_v33, %v3280_v7 }
 0x412   : > { %v3447_v60 = vadd.f32 %v3446_v53, %v3362_v55  ;;  %v7291_v57 = vpop.f32.mrf.mxu1 }
 0x413   : > { %v8653_v45 = vadd.f32 %v7291_v57, %v3453_v49 }
 0x414   : > { %v3525_v46 = vpop.f32.mrf.mxu1 }
 0x415   : > { %9054 = vst [vmem:[#allocation8_spill] sm:$0xff] %v8653_v45  ;;  %v8657_v63 = vadd.f32 %v3525_v46, %v3447_v60 }
 0x417   : > { %9056 = vst [vmem:[#allocation9_spill] sm:$0xff] %v8657_v63 }
 0x41c   : > { %v7310_v48 = vpop.f32.mrf.mxu0 }
 0x41e   : > { %v3626_v51 = vpop.f32.mrf.mxu0 }
 0x424   : > { %v7329_v26 = vpop.f32.mrf.mxu1 }
 0x425   : > { %v3754_v42 = vadd.f32 %v7329_v26, %v7310_v48 }
 0x426   : > { %v3747_v40 = vpop.f32.mrf.mxu1 }
 0x427   : > { %v3748_v12 = vadd.f32 %v3747_v40, %v3626_v51  ;;  %v7727_v40 = vld [vmem:[%s7954_s9] sm:$0xff] }
 0x42d   : > { %v7348_v58 = vpop.f32.mrf.mxu0 }
 0x42e   : > { %v3849_v38 = vadd.f32 %v7348_v58, %v3754_v42 }
 0x42f   : > { %v3841_v30 = vpop.f32.mrf.mxu0 }
 0x430   : > { %v3842_v53 = vadd.f32 %v3841_v30, %v3748_v12  ;;  %v7728_v30 = vld [vmem:[%s8179_s16] sm:$0xff] }
 0x436   : > { %v7367_v34 = vpop.f32.mrf.mxu1 }
 0x437   : > { %v3938_v49 = vadd.f32 %v7367_v34, %v3849_v38  ;;  %v4633_v34 = vmul.f32 %v7728_v30, %v7727_v40  ;;  %v9067_v40 = vld [vmem:[#allocation14_spill] sm:$0xff] }
 0x438   : > { %v3929_v33 = vpop.f32.mrf.mxu1  ;;  %v5742_v30 = vadd.f32 0.0001, %v9067_v40 }
 0x439   : > { %v3930_v60 = vadd.f32 %v3929_v33, %v3842_v53  ;;  %v4636_v12 = vsel %vm261_vm0, %v4633_v34, 0 }
 0x43a   : > { %v8671_v38 = vand.u32 4294901760, %v4636_v12 }
 0x43c   : > { %v8680_v53 = vsub.f32 %v4636_v12, %v8671_v38 }
 0x43f   : > { %v7386_v7 = vpop.f32.mrf.mxu0 }
 0x440   : > { %v4039_v57 = vadd.f32 %v7386_v7, %v3938_v49 }
 0x441   : > { %v4032_v55 = vpop.f32.mrf.mxu0 }
 0x442   : > { %v4033_v44 = vadd.f32 %v4032_v55, %v3930_v60  ;;  %v4716_v55 = vand.u32 4294901760, %v8680_v53 }
 0x448   : > { %v7405_v46 = vpop.f32.mrf.mxu1 }
 0x449   : > { %v4124_v29 = vadd.f32 %v7405_v46, %v4039_v57 }
 0x44a   : > { %v4117_v13 = vpop.f32.mrf.mxu1 }
 0x44b   : > { %v4156_v63 = vand.u32 4294901760, %v4124_v29  ;;  %v4118_v50 = vadd.f32 %v4117_v13, %v4033_v44  ;;  %v7729_v44 = vld [vmem:[%s7954_s9 + $0x8] sm:$0xff] }
 0x44c   : > { %v7730_v13 = vld [vmem:[%s8179_s16 + $0x8] sm:$0xff] }
 0x44d   : > { %v4244_v45 = vsub.f32 %v4124_v29, %v4156_v63  ;;  %v4159_v62 = vand.u32 4294901760, %v4118_v50  ;;  %7406 = vmatprep.subr.mxu0 %v4156_v63  ;;  %v4634_v29 = vmul.f32 %v7730_v13, %v7729_v44 }
 0x44e   : > { %7407 = vmatpush3.msra.mxu0 %v4156_v63 }
 0x44f   : > { %v4251_v48 = vsub.f32 %v4118_v50, %v4159_v62  ;;  %7408 = vmatprep.subr.mxu0 %v4159_v62  ;;  %v4245_v51 = vand.u32 4294901760, %v4244_v45 }
 0x450   : > { %7409 = vmatpush3.msra.mxu0 %v4159_v62 }
 0x451   : > { %7420 = vmatprep.subr.mxu0 %v4244_v45  ;;  %7411 = vmatmul.mubr.f32.vlgmr.msra.gmra.mxu0 %v8172_v31  ;;  %v4246_v26 = vsub.f32 %v4244_v45, %v4245_v51  ;;  %v4252_v58 = vand.u32 4294901760, %v4251_v48 }
 0x452   : > { %7421 = vmatpush3.msra.mxu0 %v4244_v45  ;;  %7424 = vmatprep.mubr.f32.mxu0 %v8148_v1  ;;  %v4639_v45 = vsel %vm261_vm0, %v4634_v29, 0  ;;  %v9068_v29 = vld [vmem:[#allocation17_spill] sm:$0xff] }
 0x453   : > { %7422 = vmatprep.subr.mxu0 %v4251_v48  ;;  %v4247_v42 = vand.u32 4294901760, %v4246_v26  ;;  %v4253_v50 = vsub.f32 %v4251_v48, %v4252_v58  ;;  %v8674_v33 = vand.u32 4294901760, %v4639_v45 }
 0x454   : > { %7423 = vmatpush3.msra.mxu0 %v4251_v48  ;;  %v9064_v48 = vld [vmem:[#allocation9_spill] sm:$0xff] }
 0x455   : > { %7413 = vmatprep.subr.mxu1 %v4247_v42  ;;  %7434 = vmatprep.subr.mxu0 %v4245_v51  ;;  %v4254_v7 = vand.u32 4294901760, %v4253_v50  ;;  %v8685_v49 = vsub.f32 %v4639_v45, %v8674_v33 }
 0x456   : > { %7414 = vmatpush3.msra.mxu1 %v4247_v42  ;;  %7425 = vmatmul.mubr.f32.vlgmr.msra.gmra.mxu0 %v8165_v43  ;;  %v5741_v42 = vadd.f32 0.0001, %v9068_v29 }
 0x457   : > { %7435 = vmatpush3.msra.mxu0 %v4245_v51  ;;  %7415 = vmatprep.subr.mxu1 %v4254_v7  ;;  %v4726_v60 = vand.u32 4294901760, %v8685_v49  ;;  %v9065_v51 = vld [vmem:[#allocation13_spill] sm:$0xff] }
 0x458   : > { %7436 = vmatprep.subr.mxu0 %v4252_v58  ;;  %7416 = vmatpush3.msra.mxu1 %v4254_v7  ;;  %v9066_v26 = vsub.f32 %v9064_v48, %v9065_v51 }
 0x459   : > { %7437 = vmatpush3.msra.mxu0 %v4252_v58  ;;  %7418 = vmatmul.mubr.f32.vlgmr.msra.gmra.mxu1 %v8162_v32 }
 0x45a   : > { %7427 = vmatprep.subr.mxu1 %v4156_v63  ;;  %7438 = vmatprep.mubr.f32.mxu0 %v8145_v0 }
 0x45b   : > { %7448 = vmatprep.subr.mxu0 %v7884_v3  ;;  %7428 = vmatpush3.msra.mxu1 %v4156_v63 }
 0x45c   : > { %7439 = vmatmul.mubr.f32.vlgmr.msra.gmra.mxu0 %v8162_v32  ;;  %7429 = vmatprep.subr.mxu1 %v4159_v62 }
 0x45d   : > { %7449 = vmatpush3.msra.mxu0 %v7884_v3  ;;  %7430 = vmatpush3.msra.mxu1 %v4159_v62 }
 0x45e   : > { %7450 = vmatprep.subr.mxu0 %v7886_v4  ;;  %7431 = vmatprep.mubr.f32.mxu1 %v8152_v2 }
 0x45f   : > { %7451 = vmatpush3.msra.mxu0 %v7886_v4  ;;  %7432 = vmatmul.mubr.f32.vlgmr.msra.gmra.mxu1 %v8168_v54 }
 0x460   : > { %7441 = vmatprep.subr.mxu1 %v4156_v63  ;;  %7452 = vmatprep.subr.mxu0 %v7888_v5 }
 0x461   : > { %7442 = vmatpush3.msra.mxu1 %v4156_v63  ;;  %7453 = vmatpush3.msra.mxu0 %v7888_v5  ;;  %v4717_v63 = vsub.f32 %v8680_v53, %v4716_v55 }
 0x462   : > { %7443 = vmatprep.subr.mxu1 %v4159_v62  ;;  %7454 = vmatprep.subr.mxu0 %v7899_v9 }
 0x463   : > { %7444 = vmatpush3.msra.mxu1 %v4159_v62  ;;  %7445 = vmatprep.mubr.f32.mxu1 %v8145_v0  ;;  %v4727_v62 = vsub.f32 %v8685_v49, %v4726_v60  ;;  %v4718_v57 = vand.u32 4294901760, %v4717_v63 }
 0x464   : > { %7455 = vmatpush3.msra.mxu0 %v7899_v9  ;;  %7446 = vmatmul.mubr.f32.vlgmr.msra.gmra.mxu1 %v8162_v32 }
 0x465   : > { %7456 = vmatprep.subr.mxu0 %v7901_v10  ;;  %7467 = vmatprep.subr.mxu1 %v7988_v36 }
 0x466   : > { %7457 = vmatpush3.msra.mxu0 %v7901_v10  ;;  %7468 = vmatpush3.msra.mxu1 %v7988_v36  ;;  %v4728_v36 = vand.u32 4294901760, %v4727_v62 }
 0x467   : > { %7458 = vmatprep.subr.mxu0 %v7903_v11  ;;  %7469 = vmatprep.subr.mxu1 %v7990_v37 }
 0x468   : > { %7459 = vmatpush3.msra.mxu0 %v7903_v11  ;;  %7470 = vmatpush3.msra.mxu1 %v7990_v37 }
 0x469   : > { %7460 = vmatprep.subr.mxu0 %v7921_v16  ;;  %7471 = vmatprep.subr.mxu1 %v8004_v41 }
 0x46a   : > { %7461 = vmatpush3.msra.mxu0 %v7921_v16  ;;  %7472 = vmatpush3.msra.mxu1 %v8004_v41 }
 0x46b   : > { %7462 = vmatprep.subr.mxu0 %v7947_v24  ;;  %7473 = vmatprep.subr.mxu1 %v8020_v47 }
 0x46c   : > { %7463 = vmatpush3.msra.mxu0 %v7947_v24  ;;  %7474 = vmatpush3.msra.mxu1 %v8020_v47 }
 0x46d   : > { %7464 = vmatprep.mubr.f32.mxu0 %v4718_v57  ;;  %7475 = vmatprep.subr.mxu1 %v8037_v52 }
 0x46e   : > { %7486 = vmatprep.subr.mxu0 %v7916_v14  ;;  %7465 = vmatmul.mubr.f32.vlgmr.msra.gmra.mxu0 %v4728_v36 }
 0x46f   : > { %7476 = vmatpush3.msra.mxu1 %v8037_v52  ;;  %7487 = vmatpush3.msra.mxu0 %v7916_v14  ;;  %v9060_v52 = vld [vmem:[#allocation8_spill] sm:$0xff] }
 0x470   : > { %7477 = vmatprep.subr.mxu1 %v8046_v56  ;;  %7488 = vmatprep.subr.mxu0 %v7919_v15 }
 0x471   : > { %7478 = vmatpush3.msra.mxu1 %v8046_v56  ;;  %7489 = vmatpush3.msra.mxu0 %v7919_v15  ;;  %v9061_v56 = vld [vmem:[#allocation5_spill] sm:$0xff] }
 0x472   : > { %7479 = vmatprep.subr.mxu1 %v8056_v59  ;;  %7490 = vmatprep.subr.mxu0 %v7924_v17 }
 0x473   : > { %7480 = vmatpush3.msra.mxu1 %v8056_v59  ;;  %7491 = vmatpush3.msra.mxu0 %v7924_v17  ;;  %v9062_v59 = vsub.f32 %v9060_v52, %v9061_v56 }
 0x474   : > { %7481 = vmatprep.subr.mxu1 %v8061_v61  ;;  %7492 = vmatprep.subr.mxu0 %v7928_v18 }
 0x475   : > { %7482 = vmatpush3.msra.mxu1 %v8061_v61  ;;  %7483 = vmatprep.mubr.f32.mxu1 %v8671_v38 }
 0x476   : > { %7493 = vmatpush3.msra.mxu0 %v7928_v18  ;;  %7484 = vmatmul.mubr.f32.vlgmr.msra.gmra.mxu1 %v8674_v33 }
 0x477   : > { %7494 = vmatprep.subr.mxu0 %v7932_v19  ;;  %7505 = vmatprep.subr.mxu1 %v7884_v3 }
 0x478   : > { %7495 = vmatpush3.msra.mxu0 %v7932_v19  ;;  %7506 = vmatpush3.msra.mxu1 %v7884_v3 }
 0x479   : > { %7496 = vmatprep.subr.mxu0 %v7935_v20  ;;  %7507 = vmatprep.subr.mxu1 %v7886_v4 }
 0x47a   : > { %7497 = vmatpush3.msra.mxu0 %v7935_v20  ;;  %7508 = vmatpush3.msra.mxu1 %v7886_v4 }
 0x47b   : > { %7498 = vmatprep.subr.mxu0 %v7967_v28  ;;  %7509 = vmatprep.subr.mxu1 %v7888_v5 }
 0x47c   : > { %7499 = vmatpush3.msra.mxu0 %v7967_v28  ;;  %7510 = vmatpush3.msra.mxu1 %v7888_v5 }
 0x47d   : > { %7500 = vmatprep.subr.mxu0 %v7995_v39  ;;  %7511 = vmatprep.subr.mxu1 %v7899_v9 }
 0x47e   : > { %7501 = vmatpush3.msra.mxu0 %v7995_v39  ;;  %7502 = vmatprep.mubr.f32.mxu0 %v8680_v53  ;;  %v9059_v39 = vld [vmem:[#allocation10_spill] sm:$0xff] }
 0x47f   : > { %7512 = vmatpush3.msra.mxu1 %v7899_v9  ;;  %7503 = vmatmul.mubr.f32.vlgmr.msra.gmra.mxu0 %v8685_v49 }
 0x480   : > { %7513 = vmatprep.subr.mxu1 %v7901_v10  ;;  %7524 = vmatprep.subr.mxu0 %v7939_v21 }
 0x481   : > { %7514 = vmatpush3.msra.mxu1 %v7901_v10  ;;  %7525 = vmatpush3.msra.mxu0 %v7939_v21 }
 0x482   : > { %7515 = vmatprep.subr.mxu1 %v7903_v11  ;;  %7526 = vmatprep.subr.mxu0 %v7942_v22 }
 0x483   : > { %7516 = vmatpush3.msra.mxu1 %v7903_v11  ;;  %7527 = vmatpush3.msra.mxu0 %v7942_v22 }
 0x484   : > { %7517 = vmatprep.subr.mxu1 %v7921_v16  ;;  %7528 = vmatprep.subr.mxu0 %v7945_v23 }
 0x485   : > { %7518 = vmatpush3.msra.mxu1 %v7921_v16  ;;  %7529 = vmatpush3.msra.mxu0 %v7945_v23 }
 0x486   : > { %7519 = vmatprep.subr.mxu1 %v7947_v24  ;;  %7530 = vmatprep.subr.mxu0 %v7958_v25 }
 0x487   : > { %7520 = vmatpush3.msra.mxu1 %v7947_v24  ;;  %7521 = vmatprep.mubr.f32.mxu1 %v4716_v55 }
 0x488   : > { %7531 = vmatpush3.msra.mxu0 %v7958_v25  ;;  %7522 = vmatmul.mubr.f32.vlgmr.msra.gmra.mxu1 %v4726_v60 }
 0x489   : > { %7532 = vmatprep.subr.mxu0 %v7964_v27  ;;  %7543 = vmatprep.subr.mxu1 %v7884_v3 }
 0x48a   : > { %7533 = vmatpush3.msra.mxu0 %v7964_v27  ;;  %7544 = vmatpush3.msra.mxu1 %v7884_v3  ;;  %v9058_v3 = vld [vmem:[#allocation7_spill] sm:$0xff] }
 0x48b   : > { %7534 = vmatprep.subr.mxu0 %v7985_v35  ;;  %7545 = vmatprep.subr.mxu1 %v7886_v4 }
 0x48c   : > { %7535 = vmatpush3.msra.mxu0 %v7985_v35  ;;  %7546 = vmatpush3.msra.mxu1 %v7886_v4 }
 0x48d   : > { %7536 = vmatprep.subr.mxu0 %v9036_v6  ;;  %7547 = vmatprep.subr.mxu1 %v7888_v5 }
 0x48e   : > { %7537 = vmatpush3.msra.mxu0 %v9036_v6  ;;  %7548 = vmatpush3.msra.mxu1 %v7888_v5  ;;  %v9063_v6 = vld [vmem:[#allocation15_spill] sm:$0xff] }
 0x48f   : > { %7538 = vmatprep.subr.mxu0 %v9037_v8  ;;  %7549 = vmatprep.subr.mxu1 %v7899_v9 }
 0x490   : > { %7539 = vmatpush3.msra.mxu0 %v9037_v8  ;;  %7540 = vmatprep.mubr.f32.mxu0 %v8671_v38 }
 0x491   : > { %7550 = vmatpush3.msra.mxu1 %v7899_v9  ;;  %7541 = vmatmul.mubr.f32.vlgmr.msra.gmra.mxu0 %v8674_v33 }
 0x492   : > { %7551 = vmatprep.subr.mxu1 %v7901_v10  ;;  %7559 = vmatprep.mubr.f32.mxu1 %v8671_v38 }
 0x493   : > { %7552 = vmatpush3.msra.mxu1 %v7901_v10  ;;  %7566 = vmatprep.mubr.f32.mxu0 %v9058_v3 }
 0x494   : > { %7553 = vmatprep.subr.mxu1 %v7903_v11 }
 0x495   : > { %7554 = vmatpush3.msra.mxu1 %v7903_v11 }
 0x496   : > { %7555 = vmatprep.subr.mxu1 %v7921_v16 }
 0x497   : > { %7556 = vmatpush3.msra.mxu1 %v7921_v16 }
 0x498   : > { %7557 = vmatprep.subr.mxu1 %v7947_v24 }
 0x499   : > { %7558 = vmatpush3.msra.mxu1 %v7947_v24 }
 0x49a   : > { %7560 = vmatmul.mubr.f32.vlgmr.msra.gmra.mxu1 %v8674_v33 }
 0x49b   : > { %7573 = vmatprep.mubr.f32.mxu1 %v8145_v0 }
 0x511   : > { %v7412_v4 = vpop.f32.mrf.mxu0 }
 0x513   : > { %v4200_v5 = vpop.f32.mrf.mxu0 }
 0x516   : > { %v7426_v9 = vpop.f32.mrf.mxu0 }
 0x518   : > { %v4373_v14 = vpop.f32.mrf.mxu0 }
 0x519   : > { %v7419_v10 = vpop.f32.mrf.mxu1 }
 0x51a   : > { %v4298_v15 = vadd.f32 %v7419_v10, %v7412_v4 }
 0x51b   : > { %v4291_v17 = vpop.f32.mrf.mxu1 }
 0x51c   : > { %v4381_v11 = vadd.f32 %v7426_v9, %v4298_v15  ;;  %v4292_v18 = vadd.f32 %v4291_v17, %v4200_v5  ;;  %v7440_v19 = vpop.f32.mrf.mxu0 }
 0x51e   : > { %v4374_v20 = vadd.f32 %v4373_v14, %v4292_v18  ;;  %v4540_v23 = vpop.f32.mrf.mxu0 }
 0x51f   : > { %v7433_v16 = vpop.f32.mrf.mxu1 }
 0x520   : > { %v4464_v21 = vadd.f32 %v7433_v16, %v4381_v11 }
 0x521   : > { %v4455_v22 = vpop.f32.mrf.mxu1 }
 0x522   : > { %v4547_v24 = vadd.f32 %v7440_v19, %v4464_v21  ;;  %v4456_v25 = vadd.f32 %v4455_v22, %v4374_v20 }
 0x524   : > { %v4541_v27 = vadd.f32 %v4540_v23, %v4456_v25  ;;  %v7447_v28 = vpop.f32.mrf.mxu1 }
 0x525   : > { %v4626_v35 = vadd.f32 %v7447_v28, %v4547_v24 }
 0x526   : > { %v4619_v37 = vpop.f32.mrf.mxu1 }
 0x527   : > { %v4632_v41 = vsub.f32 %v4626_v35, %v9059_v39  ;;  %v4620_v47 = vadd.f32 %v4619_v37, %v4541_v27  ;;  %v253_v39 = vld [vmem:[%s9007_s4 + $0x8] sm:$0xff] }
 0x528   : > { %v8861_v56 = vand.u32 4294901760, %v253_v39 }
 0x529   : > { %v5744_v61 = vadd.f32 %v4632_v41, %v9062_v59  ;;  %v4631_v8 = vsub.f32 %v4620_v47, %v9063_v6  ;;  %v252_v59 = vld [vmem:[%s9007_s4] sm:$0xff] }
 0x52a   : > { %v8872_v48 = vsub.f32 %v253_v39, %v8861_v56  ;;  %v8876_v51 = vand.u32 4294901760, %v252_v59 }
 0x52b   : > { %v5746_v46 = vmul.f32 1.0208334, %v5744_v61  ;;  %v5743_v58 = vadd.f32 %v4631_v8, %v9066_v26  ;;  %v7793_v61 = vmov 0.0  }
 0x52c   : > { %v5901_v40 = vand.u32 4294901760, %v8872_v48 }
 0x52d   : > { %v5748_v34 = vadd.f32 0.0009, %v5746_v46  ;;  %v5745_v44 = vmul.f32 1.0208334, %v5743_v58 }
 0x52e   : > { %v7466_v12 = vpop.f32.mrf.mxu0 }
 0x52f   : > { %v8814_v13 = vmul.f32 %v5748_v34, %v5742_v30  ;;  %v5747_v50 = vadd.f32 0.0009, %v5745_v44  ;;  %v8887_v30 = vsub.f32 %v252_v59, %v8876_v51  ;;  %v5902_v44 = vsub.f32 %v8872_v48, %v5901_v40 }
 0x530   : > { %v4720_v45 = vpop.f32.mrf.mxu0 }
 0x531   : > { %v8817_v7 = vmul.f32 %v5747_v50, %v5741_v42  ;;  %v5908_v29 = vand.u32 4294901760, %v8887_v30  ;;  %v5903_v42 = vand.u32 4294901760, %v5902_v44  ;;  %7723 = vrcp.f32 %v8814_v13 }
 0x533   : > { %v5909_v50 = vsub.f32 %v8887_v30, %v5908_v29  ;;  %7725 = vrcp.f32 %v8817_v7 }
 0x536   : > { %v7485_v38 = vpop.f32.mrf.mxu1 }
 0x537   : > { %v4848_v60 = vadd.f32 %v7485_v38, %v7466_v12  ;;  %v5910_v12 = vand.u32 4294901760, %v5909_v50 }
 0x538   : > { %v4841_v53 = vpop.f32.mrf.mxu1 }
 0x539   : > { %v4842_v62 = vadd.f32 %v4841_v53, %v4720_v45 }
 0x53f   : > { %v7504_v33 = vpop.f32.mrf.mxu0 }
 0x540   : > { %v4943_v57 = vadd.f32 %v7504_v33, %v4848_v60 }
 0x541   : > { %v4935_v49 = vpop.f32.mrf.mxu0 }
 0x542   : > { %v4936_v3 = vadd.f32 %v4935_v49, %v4842_v62 }
 0x548   : > { %v7523_v55 = vpop.f32.mrf.mxu1 }
 0x549   : > { %v5032_v4 = vadd.f32 %v7523_v55, %v4943_v57 }
 0x54a   : > { %v5023_v36 = vpop.f32.mrf.mxu1 }
 0x54b   : > { %v5024_v9 = vadd.f32 %v5023_v36, %v4936_v3 }
 0x551   : > { %v7542_v63 = vpop.f32.mrf.mxu0 }
 0x552   : > { %v5133_v10 = vadd.f32 %v7542_v63, %v5032_v4 }
 0x553   : > { %v5126_v5 = vpop.f32.mrf.mxu0 }
 0x554   : > { %v5127_v15 = vadd.f32 %v5126_v5, %v5024_v9  ;;  %v7724_v5 = vpop.eup %7723 }
 0x55a   : > { %v7561_v14 = vpop.f32.mrf.mxu1 }
 0x55b   : > { %v5218_v17 = vadd.f32 %v7561_v14, %v5133_v10 }
 0x55c   : > { %v5211_v11 = vpop.f32.mrf.mxu1 }
 0x55d   : > { %v5250_v18 = vand.u32 4294901760, %v5218_v17  ;;  %v5212_v19 = vadd.f32 %v5211_v11, %v5127_v15  ;;  %v7726_v15 = vpop.eup %7725 }
 0x55f   : > { %v5338_v20 = vsub.f32 %v5218_v17, %v5250_v18  ;;  %v5253_v16 = vand.u32 4294901760, %v5212_v19  ;;  %7562 = vmatprep.subr.mxu0 %v5250_v18 }
 0x560   : > { %7563 = vmatpush3.msra.mxu0 %v5250_v18 }
 0x561   : > { %v5345_v21 = vsub.f32 %v5212_v19, %v5253_v16  ;;  %7564 = vmatprep.subr.mxu0 %v5253_v16  ;;  %v5339_v22 = vand.u32 4294901760, %v5338_v20 }
 0x562   : > { %7565 = vmatpush3.msra.mxu0 %v5253_v16 }
 0x563   : > { %7576 = vmatprep.subr.mxu0 %v5338_v20  ;;  %7567 = vmatmul.mubr.f32.vlgmr.msra.gmra.mxu0 %v8172_v31  ;;  %v5340_v23 = vsub.f32 %v5338_v20, %v5339_v22  ;;  %v5346_v24 = vand.u32 4294901760, %v5345_v21 }
 0x564   : > { %7577 = vmatpush3.msra.mxu0 %v5338_v20  ;;  %7580 = vmatprep.mubr.f32.mxu0 %v8148_v1  ;;  %v256_v1 = vld [vmem:[%s9007_s4 + $0x20] sm:$0xff] }
 0x565   : > { %7578 = vmatprep.subr.mxu0 %v5345_v21  ;;  %v5341_v25 = vand.u32 4294901760, %v5340_v23  ;;  %v5347_v27 = vsub.f32 %v5345_v21, %v5346_v24 }
 0x566   : > { %7579 = vmatpush3.msra.mxu0 %v5345_v21  ;;  %v5753_v21 = vmul.f32 %v7726_v15, %v8817_v7 }
 0x567   : > { %7569 = vmatprep.subr.mxu1 %v5341_v25  ;;  %7590 = vmatprep.subr.mxu0 %v5339_v22  ;;  %v5348_v28 = vand.u32 4294901760, %v5347_v27 }
 0x568   : > { %7570 = vmatpush3.msra.mxu1 %v5341_v25  ;;  %7581 = vmatmul.mubr.f32.vlgmr.msra.gmra.mxu0 %v8165_v43  ;;  %v255_v43 = vld [vmem:[%s9007_s4 + $0x18] sm:$0xff]  ;;  %v5755_v39 = vsub.f32 2.0, %v5753_v21 }
 0x569   : > { %7591 = vmatpush3.msra.mxu0 %v5339_v22  ;;  %7571 = vmatprep.subr.mxu1 %v5348_v28  ;;  %v8840_v31 = vand.u32 4294901760, %v255_v43  ;;  %v9069_v22 = vld [vmem:[#allocation11_spill] sm:$0xff] }
 0x56a   : > { %7592 = vmatprep.subr.mxu0 %v5346_v24  ;;  %7572 = vmatpush3.msra.mxu1 %v5348_v28  ;;  %v9070_v28 = vld [vmem:[#allocation16_spill] sm:$0xff]  ;;  %v5757_v7 = vmul.f32 %v7726_v15, %v5755_v39 }
 0x56b   : > { %7593 = vmatpush3.msra.mxu0 %v5346_v24  ;;  %7574 = vmatmul.mubr.f32.vlgmr.msra.gmra.mxu1 %v8162_v32  ;;  %v8847_v35 = vsub.f32 %v255_v43, %v8840_v31  ;;  %v9071_v43 = vld [vmem:[#allocation6_spill] sm:$0xff] }
 0x56c   : > { %7583 = vmatprep.subr.mxu1 %v5250_v18  ;;  %7587 = vmatprep.mubr.f32.mxu1 %v8152_v2  ;;  %v8832_v2 = vand.u32 4294901760, %v256_v1 }
 0x56d   : > { %7584 = vmatpush3.msra.mxu1 %v5250_v18  ;;  %7594 = vmatprep.mubr.f32.mxu0 %v8145_v0  ;;  %v5887_v47 = vand.u32 4294901760, %v8847_v35 }
 0x56e   : > { %7585 = vmatprep.subr.mxu1 %v5253_v16  ;;  %7595 = vmatmul.mubr.f32.vlgmr.msra.gmra.mxu0 %v8162_v32 }
 0x56f   : > { %7586 = vmatpush3.msra.mxu1 %v5253_v16  ;;  %v5888_v8 = vsub.f32 %v8847_v35, %v5887_v47  ;;  %7604 = vmatprep.subr.mxu0 %v7793_v61 }
 0x570   : > { %7588 = vmatmul.mubr.f32.vlgmr.msra.gmra.mxu1 %v8168_v54  ;;  %7597 = vmatprep.subr.mxu1 %v5250_v18  ;;  %v8838_v54 = vsub.f32 %v256_v1, %v8832_v2 }
 0x571   : > { %7598 = vmatpush3.msra.mxu1 %v5250_v18  ;;  %7601 = vmatprep.mubr.f32.mxu1 %v8145_v0  ;;  %v254_v0 = vld [vmem:[%s9007_s4 + $0x10] sm:$0xff]  ;;  %v5889_v26 = vand.u32 4294901760, %v5888_v8  ;;  %v5754_v18 = vmul.f32 %v7724_v5, %v8814_v13 }
 0x572   : > { %7599 = vmatprep.subr.mxu1 %v5253_v16  ;;  %v8849_v37 = vand.u32 4294901760, %v254_v0  ;;  %7605 = vmatpush3.msra.mxu0 %v8832_v2 }
 0x573   : > { %7600 = vmatpush3.msra.mxu1 %v5253_v16  ;;  %7606 = vmatprep.subr.mxu0 %v7793_v61  ;;  %v5756_v25 = vsub.f32 2.0, %v5754_v18 }
 0x574   : > { %7602 = vmatmul.mubr.f32.vlgmr.msra.gmra.mxu1 %v8162_v32  ;;  %v5880_v32 = vand.u32 4294901760, %v8838_v54  ;;  %v8859_v52 = vsub.f32 %v254_v0, %v8849_v37  ;;  %7617 = vmatprep.subr.mxu1 %v7793_v61  ;;  %v5732_v0 = vadd.f32 0.0001, %v9071_v43 }
 0x575   : > { %7627 = vmatprep.mubr.msk.f32.mxu1 %vm7794_vm2, %v7793_v61  ;;  %7607 = vmatpush3.msra.mxu0 %v8840_v31 }
 0x576   : > { %v5881_v41 = vsub.f32 %v8838_v54, %v5880_v32  ;;  %v5894_v46 = vand.u32 4294901760, %v8859_v52  ;;  %7608 = vmatprep.subr.mxu0 %v7793_v61  ;;  %7614 = vmatprep.mubr.msk.f32.mxu0 %vm7794_vm2, %v7793_v61 }
 0x577   : > { %7609 = vmatpush3.msra.mxu0 %v8849_v37 }
 0x578   : > { %v5882_v6 = vand.u32 4294901760, %v5881_v41  ;;  %v5895_v58 = vsub.f32 %v8859_v52, %v5894_v46  ;;  %7610 = vmatprep.subr.mxu0 %v7793_v61 }
 0x579   : > { %7611 = vmatpush3.msra.mxu0 %v8861_v56 }
 0x57a   : > { %7618 = vmatpush3.msra.mxu1 %v5882_v6  ;;  %v5896_v34 = vand.u32 4294901760, %v5895_v58  ;;  %7612 = vmatprep.subr.mxu0 %v7793_v61  ;;  %v9072_v6 = vld [vmem:[#allocation12_spill] sm:$0xff] }
 0x57b   : > { %7619 = vmatprep.subr.mxu1 %v7793_v61  ;;  %7613 = vmatpush3.msra.mxu0 %v8876_v51  ;;  %v5731_v8 = vadd.f32 0.0001, %v9072_v6 }
 0x57c   : > { %7620 = vmatpush3.msra.mxu1 %v5889_v26  ;;  %7630 = vmatprep.subr.mxu0 %v7793_v61  ;;  %v5758_v26 = vmul.f32 %v7724_v5, %v5756_v25 }
 0x57d   : > { %7621 = vmatprep.subr.mxu1 %v7793_v61 }
 0x57e   : > { %7622 = vmatpush3.msra.mxu1 %v5896_v34 }
 0x57f   : > { %7623 = vmatprep.subr.mxu1 %v7793_v61 }
 0x580   : > { %7624 = vmatpush3.msra.mxu1 %v5903_v42 }
 0x581   : > { %7625 = vmatprep.subr.mxu1 %v7793_v61 }
 0x582   : > { %7626 = vmatpush3.msra.mxu1 %v5910_v12 }
 0x583   : > { %7643 = vmatprep.subr.mxu1 %v7793_v61 }
 0x623   : > { %v7568_v45 = vpop.f32.mrf.mxu0 }
 0x625   : > { %v5294_v38 = vpop.f32.mrf.mxu0 }
 0x628   : > { %v7582_v33 = vpop.f32.mrf.mxu0 }
 0x62a   : > { %v5467_v55 = vpop.f32.mrf.mxu0 }
 0x62b   : > { %v7575_v53 = vpop.f32.mrf.mxu1 }
 0x62c   : > { %v5392_v49 = vadd.f32 %v7575_v53, %v7568_v45 }
 0x62d   : > { %v5385_v60 = vpop.f32.mrf.mxu1 }
 0x62e   : > { %v5475_v63 = vadd.f32 %v7582_v33, %v5392_v49  ;;  %v5386_v62 = vadd.f32 %v5385_v60, %v5294_v38  ;;  %v7596_v3 = vpop.f32.mrf.mxu0 }
 0x630   : > { %v5468_v57 = vadd.f32 %v5467_v55, %v5386_v62  ;;  %v7589_v36 = vpop.f32.mrf.mxu1  ;;  %v5634_v17 = vpop.f32.mrf.mxu0 }
 0x631   : > { %v5558_v4 = vadd.f32 %v7589_v36, %v5475_v63 }
 0x632   : > { %v5549_v9 = vpop.f32.mrf.mxu1 }
 0x633   : > { %v5641_v10 = vadd.f32 %v7596_v3, %v5558_v4  ;;  %v5550_v14 = vadd.f32 %v5549_v9, %v5468_v57 }
 0x634   : > { %v7603_v11 = vpop.f32.mrf.mxu1 }
 0x635   : > { %v5635_v19 = vadd.f32 %v5634_v17, %v5550_v14  ;;  %v5720_v20 = vadd.f32 %v7603_v11, %v5641_v10 }
 0x636   : > { %v5713_v16 = vpop.f32.mrf.mxu1 }
 0x637   : > { %v5726_v23 = vsub.f32 %v5720_v20, %v9069_v22  ;;  %v5714_v24 = vadd.f32 %v5713_v16, %v5635_v19 }
 0x639   : > { %v5734_v27 = vmul.f32 2.0416667, %v5726_v23  ;;  %v5725_v1 = vsub.f32 %v5714_v24, %v9070_v28 }
 0x63b   : > { %v5736_v41 = vadd.f32 0.0009, %v5734_v27  ;;  %v5733_v59 = vmul.f32 2.0416667, %v5725_v1 }
 0x63d   : > { %v5738_v13 = vmul.f32 %v5736_v41, %v5732_v0  ;;  %v5735_v58 = vadd.f32 0.0009, %v5733_v59 }
 0x63f   : > { %v5760_v34 = vmul.f32 %v5758_v26, %v5738_v13  ;;  %v5737_v44 = vmul.f32 %v5735_v58, %v5731_v8 }
 0x641   : > { %v5759_v42 = vmul.f32 %v5757_v7, %v5737_v44  ;;  %v5764_v50 = vsel %vm5763_vm3, %v5760_v34, 0.0 }
 0x643   : > { %v5762_v12 = vsel %vm5761_vm4, %v5759_v42, 0.0 }
 0x644   : > { %v5765_v45 = vadd.f32 %v5764_v50, %v5762_v12 }
 0x646   : > { %v5766_v38 = vrot.slane %v5765_v45, 4 }
 0x648   : > { %v5767_v33 = vadd.f32 %v5766_v38, %v5765_v45 }
 0x64a   : > { %v5768_v53 = vrot.slane %v5767_v33, 2 }
 0x64c   : > { %v5769_v49 = vadd.f32 %v5768_v53, %v5767_v33 }
 0x64e   : > { %v5770_v55 = vrot.slane %v5769_v49, 1 }
 0x650   : > { %v5771_v60 = vadd.f32 %v5770_v55, %v5769_v49 }
 0x652   : > { %v5773_v63 = vsel %vm5761_vm4, %v5771_v60, 0 }
 0x653   : > { %v5845_v62 = vand.u32 4294901760, %v5773_v63 }
 0x655   : > { %v5846_v57 = vsub.f32 %v5773_v63, %v5845_v62  ;;  %7628 = vmatmul.mubr.f32.vlgmr.msra.gmra.mxu1 %v5845_v62 }
 0x656   : > { %7644 = vmatpush3.msra.mxu1 %v8832_v2  ;;  %7653 = vmatprep.mubr.msk.f32.mxu1 %vm7794_vm2, %v7793_v61 }
 0x657   : > { %7645 = vmatprep.subr.mxu1 %v7793_v61  ;;  %v5847_v36 = vand.u32 4294901760, %v5846_v57 }
 0x658   : > { %7646 = vmatpush3.msra.mxu1 %v8840_v31 }
 0x659   : > { %7647 = vmatprep.subr.mxu1 %v7793_v61  ;;  %v5848_v3 = vsub.f32 %v5846_v57, %v5847_v36 }
 0x65a   : > { %7648 = vmatpush3.msra.mxu1 %v8849_v37 }
 0x65b   : > { %7649 = vmatprep.subr.mxu1 %v7793_v61  ;;  %v5849_v4 = vand.u32 4294901760, %v5848_v3 }
 0x65c   : > { %7650 = vmatpush3.msra.mxu1 %v8861_v56 }
 0x65d   : > { %7651 = vmatprep.subr.mxu1 %v7793_v61  ;;  %7615 = vmatmul.mubr.f32.vlgmr.msra.gmra.mxu0 %v5849_v4 }
 0x65e   : > { %7631 = vmatpush3.msra.mxu0 %v8838_v54  ;;  %7652 = vmatpush3.msra.mxu1 %v8876_v51 }
 0x65f   : > { %7632 = vmatprep.subr.mxu0 %v7793_v61  ;;  %7654 = vmatmul.mubr.f32.vlgmr.msra.gmra.mxu1 %v5847_v36 }
 0x660   : > { %7669 = vmatprep.subr.mxu1 %v7793_v61  ;;  %7633 = vmatpush3.msra.mxu0 %v8847_v35 }
 0x661   : > { %7670 = vmatpush3.msra.mxu1 %v8832_v2  ;;  %7634 = vmatprep.subr.mxu0 %v7793_v61 }
 0x662   : > { %7671 = vmatprep.subr.mxu1 %v7793_v61  ;;  %7635 = vmatpush3.msra.mxu0 %v8859_v52 }
 0x663   : > { %7672 = vmatpush3.msra.mxu1 %v8840_v31  ;;  %7636 = vmatprep.subr.mxu0 %v7793_v61 }
 0x664   : > { %7673 = vmatprep.subr.mxu1 %v7793_v61  ;;  %7637 = vmatpush3.msra.mxu0 %v8872_v48 }
 0x665   : > { %7674 = vmatpush3.msra.mxu1 %v8849_v37  ;;  %7638 = vmatprep.subr.mxu0 %v7793_v61 }
 0x666   : > { %7675 = vmatprep.subr.mxu1 %v7793_v61  ;;  %7639 = vmatpush3.msra.mxu0 %v8887_v30 }
 0x667   : > { %7640 = vmatprep.mubr.msk.f32.mxu0 %vm7794_vm2, %v7793_v61  ;;  %7676 = vmatpush3.msra.mxu1 %v8861_v56 }
 0x668   : > { %7641 = vmatmul.mubr.f32.vlgmr.msra.gmra.mxu0 %v5846_v57  ;;  %7656 = vmatprep.subr.mxu0 %v7793_v61 }
 0x669   : > { %7677 = vmatprep.subr.mxu1 %v7793_v61  ;;  %7657 = vmatpush3.msra.mxu0 %v5880_v32 }
 0x66a   : > { %7678 = vmatpush3.msra.mxu1 %v8876_v51  ;;  %7679 = vmatprep.mubr.msk.f32.mxu1 %vm7794_vm2, %v7793_v61 }
 0x66b   : > { %7658 = vmatprep.subr.mxu0 %v7793_v61  ;;  %7680 = vmatmul.mubr.f32.vlgmr.msra.gmra.mxu1 %v5845_v62 }
 0x66c   : > { %7659 = vmatpush3.msra.mxu0 %v5887_v47  ;;  %7666 = vmatprep.mubr.msk.f32.mxu0 %vm7794_vm2, %v7793_v61 }
 0x66d   : > { %7660 = vmatprep.subr.mxu0 %v7793_v61 }
 0x66e   : > { %7661 = vmatpush3.msra.mxu0 %v5894_v46 }
 0x66f   : > { %7662 = vmatprep.subr.mxu0 %v7793_v61 }
 0x670   : > { %7663 = vmatpush3.msra.mxu0 %v5901_v40 }
 0x671   : > { %7664 = vmatprep.subr.mxu0 %v7793_v61 }
 0x672   : > { %7665 = vmatpush3.msra.mxu0 %v5908_v29 }
 0x673   : > { %7667 = vmatmul.mubr.f32.vlgmr.msra.gmra.mxu0 %v5845_v62 }
 0x715   : > { %v5947_v2 = vpop.f32.mrf.mxu1 }
 0x717   : > { %v7629_v54 = vpop.f32.mrf.mxu1 }
 0x71d   : > { %v5851_v31 = vpop.f32.mrf.mxu0 }
 0x71e   : > { %v5948_v46 = vadd.f32 %v5947_v2, %v5851_v31 }
 0x71f   : > { %v6107_v32 = vpop.f32.mrf.mxu1  ;;  %v7616_v35 = vpop.f32.mrf.mxu0 }
 0x721   : > { %v7655_v37 = vpop.f32.mrf.mxu1 }
 0x728   : > { %v6029_v47 = vpop.f32.mrf.mxu0 }
 0x729   : > { %v6030_v51 = vadd.f32 %v6029_v47, %v5948_v46 }
 0x72a   : > { %v7642_v52 = vpop.f32.mrf.mxu0 }
 0x72b   : > { %v6269_v56 = vpop.f32.mrf.mxu1  ;;  %v6108_v61 = vadd.f32 %v6107_v32, %v6030_v51 }
 0x72d   : > { %v7681_v48 = vpop.f32.mrf.mxu1 }
 0x733   : > { %v6193_v40 = vpop.f32.mrf.mxu0 }
 0x734   : > { %v6194_v30 = vadd.f32 %v6193_v40, %v6108_v61 }
 0x735   : > { %v7668_v29 = vpop.f32.mrf.mxu0 }
 0x736   : > { %v6270_v5 = vadd.f32 %v6269_v56, %v6194_v30 }
 0x738   : > { %6274 = vst.msk [vmem:[%s231_s13] sm:$0x1] %vm6273_vm5, %v6270_v5 }
 0x739   : > { %7744 = shalt.err (!%p7741_p3)
}
 0x73a   : > { %s7745_s6 = scalar_lea.hbm %s6286_s17, 16  ;;  %s7749_s9 = scalar_lea.hbm %s9008_s5, 32 }
 0x73b   : > { %p7746_p4 = scmp.ne.s32.totalorder %s6286_s17, %s7745_s6  ;;  %p7750_p9 = scmp.lt.s32.totalorder %s6286_s17, %s9008_s5 }
 0x73c   : > { %p7751_p10 = scmp.lt.s32.totalorder %s7749_s9, %s7745_s6 }
 0x73d   : > { %p7747_p7 = pnand %p7746_p4, %p7864_p5 }
 0x73e   : > { %p7752_p11 = por %p7751_p10, %p7750_p9 }
 0x73f   : > { %p7748_p8 = pneg %p7747_p7 }
 0x741   : > { %p7753_p12 = pnand %p7752_p11, %p7748_p8 }
 0x743   : > { %7756 = shalt.err (!%p7753_p12)
}
 0x744   : > { %7682 = dma.vmem_to_hbm [thread:$0]  (%p7864_p5), %s6289_s14, 16, %s6286_s17, %s6276_s23  }
 0x745 PF: > { %p7688_p13 = scmp.ge.s32.totalorder %s7791_s21, 2  ;;  %s6300_s12 = sand.u32 1, %s7779_s18  }
 0x746   : > { %s6301_s13 = scalar_lea.sflag [#allocation3], %s6300_s12 }
 0x747   : > { %p7685_p0 = pnand %p7688_p13, %p7868_p6 }
 0x749   : > { %p7686_p1 = pneg %p7685_p0 }
 0x74b   : > { %7774 = dma.done.wait (%p7686_p1), %s6301_s13, 16  }
 0x74c   : > { %7776 = vsyncadd (%p7686_p1), %s6301_s13, 4294967280  ;;  %p15_p2 = scmp.ge.s32.totalorder %s7851_s24, 4   ;;  %s9073_s18 = smov %s7783_s19 }
 0x74d   : > { %s9074_s19 = smov %s7787_s20  ;;  %s9075_s20 = smov %s7862_s27 }
 0x74e   : > { %s9076_s21 = smov %s7851_s24  ;;  %17 = sbr.rel (!%p15_p2) target bundleno = 3 (0x3), region = 78 }
 0x753   :  { %6305 = vsyncpa [#allocation3], 1 }
 0x754   :  { %6307 = vsyncpa [#allocation3 + $0x1], 1 }

// kernel: tpu_custom_call.1
= control target key start
LH: loop header
LB: loop body
LE: loop exit
PB: predicated region body
PF: predicated region fallthrough
CT: control target
= control target key end

     0   :  { %10 = vsyncpa [#allocation3], 0  ;;  %s1988_s0 = inlined_call_operand.vmem [shape: f32[2,16,64], index: 0, kind: input, shape index: {}]   ;;  %s1989_s1 = inlined_call_operand.vmem [shape: f32[2,16,64], index: 1, kind: input, shape index: {}]   ;;  %s1990_s2 = inlined_call_operand.vmem [shape: f32[10,16], index: 2, kind: input, shape index: {}]   ;;  %s1991_s3 = inlined_call_operand.vmem [shape: f32[64,40], index: 3, kind: input, shape index: {}]   ;;  %s1992_s4 = inlined_call_operand.vmem [shape: f32[40,4], index: 4, kind: input, shape index: {}]   ;;  %s1993_s5 = inlined_call_operand.hbm [shape: f32[2,1,4], index: 5, kind: output, shape index: {}]  }
   0x1   :  { %12 = vsyncpa [#allocation3 + $0x1], 0  ;;  %s1660_s18 = smov 0   ;;  %s1662_s19 = smov 0  }
   0x2   :  { %s1664_s20 = smov 0   ;;  %s1666_s21 = smov 0  }
   0x3 LB: > { %s1681_s22 = sadd.s32 4294967295, %s1625_s21   ;;  %s1267_s23 = sadd.s32 4294967294, %s1625_s21   ;;  %s1625_s21 = sphi %s1666_s21, %s1999_s21   ;;  %s1621_s20 = sphi %s1664_s20, %s1998_s20   ;;  %s1617_s19 = sphi %s1662_s19, %s1997_s19   ;;  %s1613_s18 = sphi %s1660_s18, %s1996_s18  }
   0x4   : > { %s1685_s24 = sadd.s32 1, %s1625_s21   ;;  %s140_s25 = sadd.s32 1, %s1621_s20 }
   0x5   : > { %s137_s26 = ssub.s32 %s1625_s21, %s1685_s24  ;;  %p150_p0 = scmp.ne.s32.totalorder %s1621_s20, %s1617_s19 }
   0x6   : > { %p138_p1 = scmp.eq.s32.totalorder %s137_s26, 0  ;;  %p151_p2 = scmp.eq.s32.totalorder %s1681_s22, 1 }
   0x7   : > { %p156_p3 = scmp.ne.s32.totalorder %s1617_s19, %s1613_s18  ;;  %p157_p4 = scmp.eq.s32.totalorder %s1267_s23, 1 }
   0x8   : > { %s1696_s27 = scalar_select %p138_p1, %s1621_s20, %s140_s25  }
   0x9   : > { %p1698_p5 = por %p151_p2, %p150_p0  ;;  %p1702_p6 = por %p157_p4, %p156_p3 }
   0xa   : > { %p1270_p7 = scmp.ge.s32.totalorder %s1625_s21, 1  ;;  %p200_p8 = scmp.lt.s32.totalorder %s1625_s21, 3 }
   0xc   : > { %p201_p9 = pnand %p1270_p7, %p200_p8 }
   0xd   : > { %p232_p10 = scmp.lt.s32.totalorder (!%p201_p9), %s1681_s22, 1  ;;  %s1296_s12 = sshll.u32 (!%p201_p9), %s1681_s22, 4 }
   0xe   : > { %204 = sbr.rel (%p201_p9) target bundleno = 1512 (0x5e8), region = 40 }
  0x13   : > { %v1711_v0 = vld [vmem:[%s1991_s3 + $0x38] sm:$0xff]  ;;  %v1716_v1 = vld [vmem:[%s1991_s3 + $0x30] sm:$0xff]  ;;  %v1724_v2 = vld [vmem:[%s1991_s3 + $0x28] sm:$0xff]  ;;  %s1727_s11 = scalar_select %p232_p10, %s1681_s22, 1  ;;  %vm261_vm0 = vcmask 523264   ;;  %vm343_vm1 = vcmask 130048  }
  0x14   : > { %1377 = vmatprep.subr.mxu0 %v1711_v0  ;;  %v1734_v3 = vld [vmem:[%s1991_s3 + $0x20] sm:$0xff]  ;;  %v1745_v4 = vld [vmem:[%s1991_s3 + $0x18] sm:$0xff]  ;;  %v1756_v6 = vld [vmem:[%s1991_s3 + $0x10] sm:$0xff]  ;;  %v1627_v59 = vmov 0.0   ;;  %vm1628_vm2 = vmmov 0   ;;  %vm1103_vm3 = vcmask 320512  }
  0x15   : > { %1378 = vmatpush3.msra.mxu0 %v1711_v0  ;;  %s1299_s14 = sshll.u32 %s1727_s11, 4  ;;  %v1763_v7 = vld [vmem:[%s1991_s3 + $0x8] sm:$0xff]  ;;  %v1770_v8 = vld [vmem:[%s1991_s3] sm:$0xff]  ;;  %v255_v60 = vld [vmem:[%s1992_s4 + $0x18] sm:$0xff]  ;;  %vm1101_vm4 = vcmask 326656   ;;  %s230_s11 = sand.u32 1, %s1617_s19  }
  0x16   : > { %1379 = vmatprep.subr.mxu0 %v1716_v1  ;;  %s236_s17 = scalar_lea.vmem %s1988_s0, %s1299_s14  ;;  %v1783_v10 = vld [vmem:[%s1990_s2] sm:$0xff]  ;;  %s241_s15 = scalar_lea.vmem %s1989_s1, %s1299_s14  ;;  %v1795_v13 = vld [vmem:[%s1990_s2 + $0x8] sm:$0x3]  ;;  %v254_v61 = vld [vmem:[%s1992_s4 + $0x10] sm:$0xff]  ;;  %vm1185_vm5 = vcmask 24576  }
  0x17   : > { %1380 = vmatpush3.msra.mxu0 %v1716_v1  ;;  %v1747_v5 = vld [vmem:[%s236_s17] sm:$0xff]  ;;  %v1774_v9 = vld [vmem:[%s236_s17 + $0x8] sm:$0xff]  ;;  %1400 = vmatprep.mubr.msk.f32.mxu1 %vm343_vm1, %v1783_v10  ;;  %s231_s13 = scalar_lea.vmem [#allocation2], %s230_s11  ;;  %s1947_s14 = scalar_lea.hbm %s1993_s5, %s1296_s12 }
  0x18   : > { %1381 = vmatprep.subr.mxu0 %v1724_v2  ;;  %1393 = vmatprep.mubr.msk.f32.mxu0 %vm261_vm0, %v1747_v5  ;;  %v1797_v14 = vld [vmem:[%s241_s15] sm:$0xff]  ;;  %v1817_v15 = vld [vmem:[%s241_s15 + $0x8] sm:$0xff]  ;;  %v581_v19 = vmul.f32 %v1747_v5, %v1747_v5  ;;  %v582_v21 = vmul.f32 %v1774_v9, %v1774_v9  ;;  %s1200_s15 = sshll.u32 %s231_s13, 4  ;;  %s1188_s23 = scalar_lea.sflag [#allocation3], %s230_s11  ;;  %s1949_s15 = int_to_ptr.vmem [resolvable:$true] %s1200_s15 }
  0x19   : > { %1382 = vmatpush3.msra.mxu0 %v1724_v2  ;;  %v743_v25 = vmul.f32 %v1797_v14, %v1797_v14  ;;  %v744_v27 = vmul.f32 %v1817_v15, %v1817_v15  ;;  %v905_v31 = vmul.f32 %v1797_v14, %v1747_v5  ;;  %v906_v33 = vmul.f32 %v1817_v15, %v1774_v9  ;;  %v256_v58 = vld [vmem:[%s1992_s4 + $0x20] sm:$0xff]  ;;  %v253_v62 = vld [vmem:[%s1992_s4 + $0x8] sm:$0xff]  ;;  %s1565_s25 = scalar_lea.vmem %s1949_s15, 16  ;;  %s1629_s22 = smov [#allocation2]  }
  0x1a   : > { %1383 = vmatprep.subr.mxu0 %v1734_v3  ;;  %v252_v63 = vld [vmem:[%s1992_s4] sm:$0xff]  ;;  %p1566_p11 = scmp.ne.s32.totalorder %s1949_s15, %s1565_s25  ;;  %s1569_s26 = sshll.u32 %s1629_s22, 4  ;;  %s1570_s26 = int_to_ptr.vmem [resolvable:$false] %s1569_s26 }
  0x1b   : > { %1384 = vmatpush3.msra.mxu0 %v1734_v3  ;;  %s1571_s30 = scalar_lea.vmem %s1570_s26, 32  ;;  %p1572_p0 = scmp.lt.s32.totalorder %s1949_s15, %s1570_s26 }
  0x1c   : > { %1385 = vmatprep.subr.mxu0 %v1745_v4  ;;  %p1567_p12 = pnand %p1566_p11, %p1698_p5  ;;  %p1573_p1 = scmp.lt.s32.totalorder %s1571_s30, %s1565_s25 }
  0x1d   : > { %1386 = vmatpush3.msra.mxu0 %v1745_v4 }
  0x1e   : > { %1387 = vmatprep.subr.mxu0 %v1756_v6  ;;  %p1568_p13 = pneg %p1567_p12  ;;  %p1574_p2 = por %p1573_p1, %p1572_p0 }
  0x1f   : > { %1388 = vmatpush3.msra.mxu0 %v1756_v6 }
  0x20   : > { %1389 = vmatprep.subr.mxu0 %v1763_v7  ;;  %p1575_p3 = pnand %p1574_p2, %p1568_p13 }
  0x21   : > { %1390 = vmatpush3.msra.mxu0 %v1763_v7 }
  0x22   : > { %1391 = vmatprep.subr.mxu0 %v1770_v8 }
  0x23   : > { %1392 = vmatpush3.msra.mxu0 %v1770_v8 }
  0x24   : > { %1394 = vmatmul.mubr.msk.f32.vlgmr.msra.gmra.mxu0 %vm261_vm0, %v1774_v9 }
  0x25   : > { %1426 = vmatprep.mubr.msk.f32.mxu0 %vm343_vm1, %v1783_v10 }
  0xe4   : > { %v1395_v11 = vpop.f32.mrf.mxu0 }
  0xe5   : > { %1396 = vmatprep.subr.mxu1 %v1395_v11 }
  0xe6   : > { %v334_v12 = vpop.f32.mrf.mxu0  ;;  %1397 = vmatpush3.msra.mxu1 %v1395_v11 }
  0xe7   : > { %1398 = vmatprep.subr.mxu1 %v334_v12 }
  0xe8   : > { %1399 = vmatpush3.msra.mxu1 %v334_v12 }
  0xe9   : > { %1401 = vmatmul.mubr.msk.f32.vlgmr.msra.gmra.mxu1 %vm343_vm1, %v1795_v13  ;;  %1403 = vmatprep.subr.mxu1 %v1711_v0 }
  0xea   : > { %1404 = vmatpush3.msra.mxu1 %v1711_v0  ;;  %1419 = vmatprep.mubr.msk.f32.mxu1 %vm261_vm0, %v1797_v14 }
  0xeb   : > { %1405 = vmatprep.subr.mxu1 %v1716_v1 }
  0xec   : > { %1406 = vmatpush3.msra.mxu1 %v1716_v1 }
  0xed   : > { %1407 = vmatprep.subr.mxu1 %v1724_v2 }
  0xee   : > { %1408 = vmatpush3.msra.mxu1 %v1724_v2 }
  0xef   : > { %1409 = vmatprep.subr.mxu1 %v1734_v3 }
  0xf0   : > { %1410 = vmatpush3.msra.mxu1 %v1734_v3 }
  0xf1   : > { %1411 = vmatprep.subr.mxu1 %v1745_v4 }
  0xf2   : > { %1412 = vmatpush3.msra.mxu1 %v1745_v4 }
  0xf3   : > { %1413 = vmatprep.subr.mxu1 %v1756_v6 }
  0xf4   : > { %1414 = vmatpush3.msra.mxu1 %v1756_v6 }
  0xf5   : > { %1415 = vmatprep.subr.mxu1 %v1763_v7 }
  0xf6   : > { %1416 = vmatpush3.msra.mxu1 %v1763_v7 }
  0xf7   : > { %1417 = vmatprep.subr.mxu1 %v1770_v8 }
  0xf8   : > { %1418 = vmatpush3.msra.mxu1 %v1770_v8 }
  0xf9   : > { %1420 = vmatmul.mubr.msk.f32.vlgmr.msra.gmra.mxu1 %vm261_vm0, %v1817_v15 }
  0xfa   : > { %1452 = vmatprep.mubr.msk.f32.mxu1 %vm343_vm1, %v1783_v10 }
 0x1a9   : > { %v1825_v16 = vpop.f32.mrf.mxu1 }
 0x1aa   : > { %v740_v34 = vmul.f32 %v1825_v16, %v1825_v16 }
 0x1ab   : > { %v1827_v17 = vpop.f32.mrf.mxu1 }
 0x1ac   : > { %v739_v38 = vmul.f32 %v1827_v17, %v1827_v17 }
 0x1b9   : > { %v1421_v18 = vpop.f32.mrf.mxu1 }
 0x1ba   : > { %1422 = vmatprep.subr.mxu0 %v1421_v18 }
 0x1bb   : > { %v497_v20 = vpop.f32.mrf.mxu1  ;;  %1423 = vmatpush3.msra.mxu0 %v1421_v18 }
 0x1bc   : > { %1424 = vmatprep.subr.mxu0 %v497_v20 }
 0x1bd   : > { %1425 = vmatpush3.msra.mxu0 %v497_v20 }
 0x1be   : > { %1427 = vmatmul.mubr.msk.f32.vlgmr.msra.gmra.mxu0 %vm343_vm1, %v1795_v13  ;;  %1429 = vmatprep.subr.mxu0 %v1711_v0 }
 0x1bf   : > { %1430 = vmatpush3.msra.mxu0 %v1711_v0  ;;  %1445 = vmatprep.mubr.msk.f32.mxu0 %vm261_vm0, %v581_v19 }
 0x1c0   : > { %1431 = vmatprep.subr.mxu0 %v1716_v1 }
 0x1c1   : > { %1432 = vmatpush3.msra.mxu0 %v1716_v1 }
 0x1c2   : > { %1433 = vmatprep.subr.mxu0 %v1724_v2 }
 0x1c3   : > { %1434 = vmatpush3.msra.mxu0 %v1724_v2 }
 0x1c4   : > { %1435 = vmatprep.subr.mxu0 %v1734_v3 }
 0x1c5   : > { %1436 = vmatpush3.msra.mxu0 %v1734_v3 }
 0x1c6   : > { %1437 = vmatprep.subr.mxu0 %v1745_v4 }
 0x1c7   : > { %1438 = vmatpush3.msra.mxu0 %v1745_v4 }
 0x1c8   : > { %1439 = vmatprep.subr.mxu0 %v1756_v6 }
 0x1c9   : > { %1440 = vmatpush3.msra.mxu0 %v1756_v6 }
 0x1ca   : > { %1441 = vmatprep.subr.mxu0 %v1763_v7 }
 0x1cb   : > { %1442 = vmatpush3.msra.mxu0 %v1763_v7 }
 0x1cc   : > { %1443 = vmatprep.subr.mxu0 %v1770_v8 }
 0x1cd   : > { %1444 = vmatpush3.msra.mxu0 %v1770_v8 }
 0x1ce   : > { %1446 = vmatmul.mubr.msk.f32.vlgmr.msra.gmra.mxu0 %vm261_vm0, %v582_v21 }
 0x1cf   : > { %1478 = vmatprep.mubr.msk.f32.mxu0 %vm343_vm1, %v1783_v10 }
 0x27e   : > { %v1855_v22 = vpop.f32.mrf.mxu0 }
 0x27f   : > { %v902_v35 = vmul.f32 %v1855_v22, %v1855_v22 }
 0x280   : > { %v1857_v23 = vpop.f32.mrf.mxu0 }
 0x281   : > { %v901_v40 = vmul.f32 %v1857_v23, %v1857_v23  ;;  %v1080_v43 = vadd.f32 %v902_v35, %v740_v34 }
 0x283   : > { %v1079_v47 = vadd.f32 %v901_v40, %v739_v38  ;;  %v1082_v49 = vadd.f32 0.0001, %v1080_v43 }
 0x285   : > { %v1081_v53 = vadd.f32 0.0001, %v1079_v47 }
 0x28e   : > { %v1447_v24 = vpop.f32.mrf.mxu0 }
 0x28f   : > { %1448 = vmatprep.subr.mxu1 %v1447_v24 }
 0x290   : > { %v655_v26 = vpop.f32.mrf.mxu0  ;;  %1449 = vmatpush3.msra.mxu1 %v1447_v24 }
 0x291   : > { %1450 = vmatprep.subr.mxu1 %v655_v26 }
 0x292   : > { %1451 = vmatpush3.msra.mxu1 %v655_v26 }
 0x293   : > { %1453 = vmatmul.mubr.msk.f32.vlgmr.msra.gmra.mxu1 %vm343_vm1, %v1795_v13  ;;  %1455 = vmatprep.subr.mxu1 %v1711_v0 }
 0x294   : > { %1456 = vmatpush3.msra.mxu1 %v1711_v0  ;;  %1471 = vmatprep.mubr.msk.f32.mxu1 %vm261_vm0, %v743_v25 }
 0x295   : > { %1457 = vmatprep.subr.mxu1 %v1716_v1 }
 0x296   : > { %1458 = vmatpush3.msra.mxu1 %v1716_v1 }
 0x297   : > { %1459 = vmatprep.subr.mxu1 %v1724_v2 }
 0x298   : > { %1460 = vmatpush3.msra.mxu1 %v1724_v2 }
 0x299   : > { %1461 = vmatprep.subr.mxu1 %v1734_v3 }
 0x29a   : > { %1462 = vmatpush3.msra.mxu1 %v1734_v3 }
 0x29b   : > { %1463 = vmatprep.subr.mxu1 %v1745_v4 }
 0x29c   : > { %1464 = vmatpush3.msra.mxu1 %v1745_v4 }
 0x29d   : > { %1465 = vmatprep.subr.mxu1 %v1756_v6 }
 0x29e   : > { %1466 = vmatpush3.msra.mxu1 %v1756_v6 }
 0x29f   : > { %1467 = vmatprep.subr.mxu1 %v1763_v7 }
 0x2a0   : > { %1468 = vmatpush3.msra.mxu1 %v1763_v7 }
 0x2a1   : > { %1469 = vmatprep.subr.mxu1 %v1770_v8 }
 0x2a2   : > { %1470 = vmatpush3.msra.mxu1 %v1770_v8 }
 0x2a3   : > { %1472 = vmatmul.mubr.msk.f32.vlgmr.msra.gmra.mxu1 %vm261_vm0, %v744_v27 }
 0x2a4   : > { %1504 = vmatprep.mubr.msk.f32.mxu1 %vm343_vm1, %v1783_v10  ;;  %v1063_v10 = vmul.f32 %v1857_v23, %v1827_v17 }
 0x353   : > { %v1454_v28 = vpop.f32.mrf.mxu1 }
 0x354   : > { %v742_v37 = vsub.f32 %v1454_v28, %v740_v34 }
 0x355   : > { %v730_v29 = vpop.f32.mrf.mxu1 }
 0x356   : > { %v741_v42 = vsub.f32 %v730_v29, %v739_v38 }
 0x363   : > { %v1473_v30 = vpop.f32.mrf.mxu1 }
 0x364   : > { %1474 = vmatprep.subr.mxu0 %v1473_v30 }
 0x365   : > { %v817_v32 = vpop.f32.mrf.mxu1  ;;  %1475 = vmatpush3.msra.mxu0 %v1473_v30 }
 0x366   : > { %1476 = vmatprep.subr.mxu0 %v817_v32 }
 0x367   : > { %1477 = vmatpush3.msra.mxu0 %v817_v32 }
 0x368   : > { %1479 = vmatmul.mubr.msk.f32.vlgmr.msra.gmra.mxu0 %vm343_vm1, %v1795_v13  ;;  %1481 = vmatprep.subr.mxu0 %v1711_v0 }
 0x369   : > { %1482 = vmatpush3.msra.mxu0 %v1711_v0  ;;  %1497 = vmatprep.mubr.msk.f32.mxu0 %vm261_vm0, %v905_v31 }
 0x36a   : > { %1483 = vmatprep.subr.mxu0 %v1716_v1 }
 0x36b   : > { %1484 = vmatpush3.msra.mxu0 %v1716_v1 }
 0x36c   : > { %1485 = vmatprep.subr.mxu0 %v1724_v2 }
 0x36d   : > { %1486 = vmatpush3.msra.mxu0 %v1724_v2  ;;  %v1068_v2 = vmul.f32 2.0, %v1825_v16 }
 0x36e   : > { %1487 = vmatprep.subr.mxu0 %v1734_v3 }
 0x36f   : > { %1488 = vmatpush3.msra.mxu0 %v1734_v3  ;;  %v1070_v5 = vmul.f32 %v1855_v22, %v1068_v2 }
 0x370   : > { %1489 = vmatprep.subr.mxu0 %v1745_v4 }
 0x371   : > { %1490 = vmatpush3.msra.mxu0 %v1745_v4  ;;  %v1064_v4 = vmul.f32 %v1855_v22, %v1825_v16  ;;  %v1072_v18 = vadd.f32 0.0001, %v1070_v5 }
 0x372   : > { %1491 = vmatprep.subr.mxu0 %v1756_v6 }
 0x373   : > { %1492 = vmatpush3.msra.mxu0 %v1756_v6 }
 0x374   : > { %1493 = vmatprep.subr.mxu0 %v1763_v7 }
 0x375   : > { %1494 = vmatpush3.msra.mxu0 %v1763_v7  ;;  %v1067_v7 = vmul.f32 2.0, %v1827_v17 }
 0x376   : > { %1495 = vmatprep.subr.mxu0 %v1770_v8 }
 0x377   : > { %1496 = vmatpush3.msra.mxu0 %v1770_v8  ;;  %v1069_v12 = vmul.f32 %v1067_v7, %v1857_v23 }
 0x378   : > { %1498 = vmatmul.mubr.msk.f32.vlgmr.msra.gmra.mxu0 %vm261_vm0, %v906_v33 }
 0x379   : > { %v1071_v21 = vadd.f32 0.0001, %v1069_v12 }
 0x428   : > { %v1480_v36 = vpop.f32.mrf.mxu0 }
 0x429   : > { %v904_v39 = vsub.f32 %v1480_v36, %v902_v35 }
 0x42a   : > { %v892_v41 = vpop.f32.mrf.mxu0 }
 0x42b   : > { %v1084_v44 = vadd.f32 %v904_v39, %v742_v37  ;;  %v903_v45 = vsub.f32 %v892_v41, %v901_v40 }
 0x42d   : > { %v1086_v46 = vmul.f32 1.0208334, %v1084_v44  ;;  %v1083_v48 = vadd.f32 %v903_v45, %v741_v42 }
 0x42f   : > { %v1088_v50 = vadd.f32 0.0009, %v1086_v46  ;;  %v1085_v51 = vmul.f32 1.0208334, %v1083_v48 }
 0x431   : > { %v1090_v52 = vmul.f32 %v1088_v50, %v1082_v49  ;;  %v1087_v54 = vadd.f32 0.0009, %v1085_v51 }
 0x433   : > { %v1089_v55 = vmul.f32 %v1087_v54, %v1081_v53  ;;  %1561 = vrcp.f32 %v1090_v52 }
 0x435   : > { %1563 = vrcp.f32 %v1089_v55 }
 0x438   : > { %v1499_v56 = vpop.f32.mrf.mxu0 }
 0x439   : > { %1500 = vmatprep.subr.mxu1 %v1499_v56 }
 0x43a   : > { %v979_v57 = vpop.f32.mrf.mxu0  ;;  %1501 = vmatpush3.msra.mxu1 %v1499_v56 }
 0x43b   : > { %1502 = vmatprep.subr.mxu1 %v979_v57 }
 0x43c   : > { %1503 = vmatpush3.msra.mxu1 %v979_v57 }
 0x43d   : > { %1505 = vmatmul.mubr.msk.f32.vlgmr.msra.gmra.mxu1 %vm343_vm1, %v1795_v13  ;;  %1507 = vmatprep.subr.mxu1 %v1627_v59 }
 0x43e   : > { %1517 = vmatprep.mubr.msk.f32.mxu1 %vm1628_vm2, %v1627_v59  ;;  %1508 = vmatpush3.msra.mxu1 %v256_v58 }
 0x43f   : > { %1509 = vmatprep.subr.mxu1 %v1627_v59 }
 0x440   : > { %1510 = vmatpush3.msra.mxu1 %v255_v60  ;;  %v1562_v0 = vpop.eup %1561 }
 0x441   : > { %1511 = vmatprep.subr.mxu1 %v1627_v59  ;;  %v1094_v3 = vmul.f32 %v1562_v0, %v1090_v52 }
 0x442   : > { %1512 = vmatpush3.msra.mxu1 %v254_v61  ;;  %v1564_v1 = vpop.eup %1563 }
 0x443   : > { %1513 = vmatprep.subr.mxu1 %v1627_v59  ;;  %v1093_v8 = vmul.f32 %v1564_v1, %v1089_v55  ;;  %v1096_v13 = vsub.f32 2.0, %v1094_v3 }
 0x444   : > { %1514 = vmatpush3.msra.mxu1 %v253_v62 }
 0x445   : > { %1515 = vmatprep.subr.mxu1 %v1627_v59  ;;  %v1095_v19 = vsub.f32 2.0, %v1093_v8  ;;  %v1098_v24 = vmul.f32 %v1562_v0, %v1096_v13 }
 0x446   : > { %1516 = vmatpush3.msra.mxu1 %v252_v63 }
 0x447   : > { %v1097_v28 = vmul.f32 %v1564_v1, %v1095_v19 }
 0x4fd   : > { %v1506_v6 = vpop.f32.mrf.mxu1 }
 0x4fe   : > { %v1066_v9 = vsub.f32 %v1506_v6, %v1064_v4 }
 0x4ff   : > { %v1054_v11 = vpop.f32.mrf.mxu1 }
 0x500   : > { %v1074_v14 = vmul.f32 2.0416667, %v1066_v9  ;;  %v1065_v15 = vsub.f32 %v1054_v11, %v1063_v10 }
 0x502   : > { %v1076_v20 = vadd.f32 0.0009, %v1074_v14  ;;  %v1073_v16 = vmul.f32 2.0416667, %v1065_v15 }
 0x504   : > { %v1078_v22 = vmul.f32 %v1076_v20, %v1072_v18  ;;  %v1075_v25 = vadd.f32 0.0009, %v1073_v16 }
 0x506   : > { %v1100_v26 = vmul.f32 %v1098_v24, %v1078_v22  ;;  %v1077_v27 = vmul.f32 %v1075_v25, %v1071_v21 }
 0x508   : > { %v1099_v17 = vmul.f32 %v1097_v28, %v1077_v27  ;;  %v1104_v23 = vsel %vm1103_vm3, %v1100_v26, 0.0 }
 0x50a   : > { %v1102_v29 = vsel %vm1101_vm4, %v1099_v17, 0.0 }
 0x50b   : > { %v1105_v30 = vadd.f32 %v1104_v23, %v1102_v29 }
 0x50d   : > { %v1106_v31 = vrot.slane %v1105_v30, 4 }
 0x50f   : > { %v1107_v32 = vadd.f32 %v1106_v31, %v1105_v30 }
 0x511   : > { %v1108_v33 = vrot.slane %v1107_v32, 2 }
 0x513   : > { %v1109_v34 = vadd.f32 %v1108_v33, %v1107_v32 }
 0x515   : > { %v1110_v35 = vrot.slane %v1109_v34, 1 }
 0x517   : > { %v1111_v36 = vadd.f32 %v1110_v35, %v1109_v34 }
 0x519   : > { %1518 = vmatmul.mubr.msk.f32.vlgmr.msra.gmra.mxu1 %vm1101_vm4, %v1111_v36 }
 0x5d9   : > { %v1181_v37 = vpop.f32.mrf.mxu1 }
 0x5da   : > { %1186 = vst.msk [vmem:[%s231_s13] sm:$0x1] %vm1185_vm5, %v1181_v37 }
 0x5db   : > { %v1519_v38 = vpop.f32.mrf.mxu1 }
 0x5dc   : > { %1578 = shalt.err (!%p1575_p3)
}
 0x5dd   : > { %s1579_s6 = scalar_lea.hbm %s1947_s14, 16  ;;  %s1583_s9 = scalar_lea.hbm %s1993_s5, 32 }
 0x5de   : > { %p1580_p4 = scmp.ne.s32.totalorder %s1947_s14, %s1579_s6  ;;  %p1584_p9 = scmp.lt.s32.totalorder %s1947_s14, %s1993_s5 }
 0x5df   : > { %p1585_p10 = scmp.lt.s32.totalorder %s1583_s9, %s1579_s6 }
 0x5e0   : > { %p1581_p7 = pnand %p1580_p4, %p1698_p5 }
 0x5e1   : > { %p1586_p11 = por %p1585_p10, %p1584_p9 }
 0x5e2   : > { %p1582_p8 = pneg %p1581_p7 }
 0x5e4   : > { %p1587_p12 = pnand %p1586_p11, %p1582_p8 }
 0x5e6   : > { %1590 = shalt.err (!%p1587_p12)
}
 0x5e7   : > { %1520 = dma.vmem_to_hbm [thread:$0]  (%p1698_p5), %s1949_s15, 16, %s1947_s14, %s1188_s23  }
 0x5e8 PF: > { %p1526_p13 = scmp.ge.s32.totalorder %s1625_s21, 2  ;;  %s1212_s12 = sand.u32 1, %s1613_s18  }
 0x5e9   : > { %s1213_s13 = scalar_lea.sflag [#allocation3], %s1212_s12 }
 0x5ea   : > { %p1523_p0 = pnand %p1526_p13, %p1702_p6 }
 0x5ec   : > { %p1524_p1 = pneg %p1523_p0 }
 0x5ee   : > { %1608 = dma.done.wait (%p1524_p1), %s1213_s13, 16  }
 0x5ef   : > { %1610 = vsyncadd (%p1524_p1), %s1213_s13, 4294967280  ;;  %p15_p2 = scmp.ge.s32.totalorder %s1685_s24, 4   ;;  %s1996_s18 = smov %s1617_s19 }
 0x5f0   : > { %s1997_s19 = smov %s1621_s20  ;;  %s1998_s20 = smov %s1696_s27 }
 0x5f1   : > { %s1999_s21 = smov %s1685_s24  ;;  %17 = sbr.rel (!%p15_p2) target bundleno = 3 (0x3), region = 78 }
 0x5f6   :  { %1217 = vsyncpa [#allocation3], 1 }
 0x5f7   :  { %1219 = vsyncpa [#allocation3 + $0x1], 1 }

</bundles_post_ra>
